<compile_context>
chip_gen: v5e
topology: v5e:2x2
jax: 0.10.0
libtpu: 0.0.40
codegen_flags: <defaults>
</compile_context>

<pallas_src>
import functools

import jax
import jax.numpy as jnp
from jax import lax
from jax.experimental import pallas as pl
from jax.experimental.pallas import tpu as pltpu


def _round_up(x, m):
    return ((x + m - 1) // m) * m


def _pick_div(n, cap, mult=1):
    """Largest divisor of n that is <= cap and a multiple of mult, else n."""
    for d in range(min(n, cap), 0, -1):
        if n % d == 0 and d % mult == 0:
            return d
    return n  # full extent is always a legal block size


# ------------------------- fused LSTM layer kernel ---------------------------
def lstm_fused_kernel(x_ref, wih_ref, whh_ref, b_ref, h0_ref, c0_ref,
                      out_ref, hT_ref, cT_ref,
                      gx_ref, h_ref, c_ref, hb_ref):
    """One (batch-tile, time-tile) grid cell of a single LSTM layer.

    x_ref  : [tt, bt, H]  bf16   layer input tile (time-major)
    wih/whh: [H, 4H]      bf16   gate order (i, f, o, g)
    b_ref  : [1, 4H]      f32    b_ih + b_hh, gate order (i, f, o, g)
    h0/c0  : [bt, H]      f32    initial state for this batch tile
    out_ref: [tt, bt, H]  bf16   hidden-state sequence (next layer's input)
    hT/cT  : [bt, H]      f32    final state (written on the last time tile)
    gx_ref : [tt, bt, 4H] f32    VMEM scratch: x @ W_ih + b for the tile
    h_ref/c_ref : [bt,H] f32, hb_ref : [bt,H] bf16  carried state scratch
    """
    tt = x_ref.shape[0]
    H = h0_ref.shape[1]
    tq = pl.program_id(1)

    @pl.when(tq == 0)
    def _():
        h_ref[...] = h0_ref[...]
        c_ref[...] = c0_ref[...]
        hb_ref[...] = h0_ref[...].astype(jnp.bfloat16)

    # Input projection for the whole tile, off the serial h->h chain.  The
    # gx intermediate lives only in VMEM (no HBM round-trip).
    # TODO(synk): for large bt*tt, do this as one reshaped [tt*bt,H]@[H,4H]
    # matmul instead of tt independent MXU pushes.
    bias = b_ref[...]
    for t in range(tt):
        gx_ref[t] = jnp.dot(x_ref[t], wih_ref[...],
                            preferred_element_type=jnp.float32) + bias

    def step(t, carry):
        gates = gx_ref[t] + jnp.dot(hb_ref[...], whh_ref[...],
                                    preferred_element_type=jnp.float32)
        # gate order (i, f, o, g): one sigmoid over 3H lanes, one tanh over H.
        # TODO(synk): with H a multiple of 128 (production configs) these
        # sub-vreg lane slices disappear; pltpu.roll realignment otherwise.
        sig = jax.nn.sigmoid(gates[:, :3 * H])
        g = jnp.tanh(gates[:, 3 * H:])
        i_g = sig[:, 0:H]
        f_g = sig[:, H:2 * H]
        o_g = sig[:, 2 * H:3 * H]
        c_new = f_g * c_ref[...] + i_g * g
        h_new = o_g * jnp.tanh(c_new)
        c_ref[...] = c_new
        h_ref[...] = h_new                    # f32 state for the hT output
        h_bf = h_new.astype(jnp.bfloat16)
        hb_ref[...] = h_bf                    # bf16 operand for next matmul
        out_ref[t] = h_bf
        return carry

    lax.fori_loop(0, tt, step, 0, unroll=min(tt, 8))

    @pl.when(tq == pl.num_programs(1) - 1)
    def _():
        hT_ref[...] = h_ref[...]
        cT_ref[...] = c_ref[...]


def lstm_layer(x_tbh, wih, whh, b, h0, c0):
    """One LSTM layer. x_tbh: [T, Bp, H] bf16 -> ([T,Bp,H] bf16, hT, cT f32)."""
    T, Bp, H = x_tbh.shape
    H4 = wih.shape[1]

    # Batch tile: multiple of 8; >= 2 tiles whenever Bp >= 16 so the
    # 'parallel' axis can be sharded across v7x's two TensorCores.
    nb8 = Bp // 8
    cap8 = 16 if nb8 == 1 else max(1, min(nb8 // 2, 16))
    bt = 8 * _pick_div(nb8, cap8)

    # Time tile: keep double-buffered x/out blocks + gx scratch under ~8 MiB,
    # comfortably inside v7x's 64 MiB VMEM (v5e/v6e have 128 MiB).
    per_step_bytes = bt * (2 * 2 * H        # x tile   (bf16, 2 buffers)
                           + 2 * 2 * H      # out tile (bf16, 2 buffers)
                           + 4 * H4)        # gx scratch (f32)
    tt = _pick_div(T, max(1, min(64, (8 * 1024 * 1024) // per_step_bytes)))

    grid = (Bp // bt, T // tt)
    out_shapes = (
        jax.ShapeDtypeStruct((T, Bp, H), jnp.bfloat16),   # sequence output
        jax.ShapeDtypeStruct((Bp, H), jnp.float32),       # hT
        jax.ShapeDtypeStruct((Bp, H), jnp.float32),       # cT
    )
    return pl.pallas_call(
        lstm_fused_kernel,
        out_shape=out_shapes,
        grid=grid,
        in_specs=[
            pl.BlockSpec((tt, bt, H), lambda bq, tq: (tq, bq, 0)),
            pl.BlockSpec((H, H4), lambda bq, tq: (0, 0)),
            pl.BlockSpec((H, H4), lambda bq, tq: (0, 0)),
            pl.BlockSpec((1, H4), lambda bq, tq: (0, 0)),
            pl.BlockSpec((bt, H), lambda bq, tq: (bq, 0)),
            pl.BlockSpec((bt, H), lambda bq, tq: (bq, 0)),
        ],
        out_specs=(
            pl.BlockSpec((tt, bt, H), lambda bq, tq: (tq, bq, 0)),
            pl.BlockSpec((bt, H), lambda bq, tq: (bq, 0)),
            pl.BlockSpec((bt, H), lambda bq, tq: (bq, 0)),
        ),
        scratch_shapes=[
            pltpu.VMEM((tt, bt, H4), jnp.float32),   # gx tile
            pltpu.VMEM((bt, H), jnp.float32),        # h carry (f32)
            pltpu.VMEM((bt, H), jnp.float32),        # c carry
            pltpu.VMEM((bt, H), jnp.bfloat16),       # h carry (bf16 operand)
        ],
        compiler_params=pltpu.CompilerParams(
            dimension_semantics=("parallel", "arbitrary")),
    )(x_tbh, wih, whh, b, h0, c0)


# ------------------------------ fc1 (logits) ----------------------------------
def fc_kernel(x_ref, w_ref, b_ref, o_ref):
    o_ref[...] = (jnp.dot(x_ref[...], w_ref[...],
                          preferred_element_type=jnp.float32)
                  + b_ref[...]).astype(o_ref.dtype)


def fc_logits(xb, w_bf16, b_f32):
    """Batch-first logits: [Bp,T,H] bf16 @ [H,Vp] bf16 + b -> [Bp,T,Vp] f32."""
    Bp, T, H = xb.shape
    Vp = w_bf16.shape[1]
    tt = _pick_div(T, 256, mult=8)     # sublane-aligned time tile (or full T)
    vt = _pick_div(Vp, 512, mult=128)  # lane-dense vocab tile
    grid = (Bp, T // tt, Vp // vt)
    # TODO(synk): add a K-reduction grid axis if H grows beyond a VMEM tile.
    return pl.pallas_call(
        fc_kernel,
        out_shape=jax.ShapeDtypeStruct((Bp, T, Vp), jnp.float32),
        grid=grid,
        in_specs=[
            pl.BlockSpec((None, tt, H), lambda bq, tq, vq: (bq, tq, 0)),
            pl.BlockSpec((H, vt), lambda bq, tq, vq: (0, vq)),
            pl.BlockSpec((1, vt), lambda bq, tq, vq: (0, vq)),
        ],
        out_specs=pl.BlockSpec((None, tt, vt), lambda bq, tq, vq: (bq, tq, vq)),
        compiler_params=pltpu.CompilerParams(
            dimension_semantics=("parallel", "parallel", "parallel")),
    )(xb, w_bf16, b_f32)


# ------------------------------ param plumbing --------------------------------
def _reorder_ifgo_to_ifog(w):
    """Reorder the last (4H) axis from PyTorch (i,f,g,o) to (i,f,o,g)."""
    i, f, g, o = jnp.split(w, 4, axis=-1)
    return jnp.concatenate([i, f, o, g], axis=-1)


def prepare_params(params, num_layers, vocab_size):
    """One-time prep: gate reorder, bf16 casts, vocab padding (outside jit)."""
    V = vocab_size
    Vp = _round_up(V, 128)
    prep = {
        "emb": params["embedding"].astype(jnp.bfloat16),
        "wih": [], "whh": [], "b": [],
        "fc_w": jnp.pad(params["fc_w"], ((0, 0), (0, Vp - V))).astype(jnp.bfloat16),
        "fc_b": jnp.pad(params["fc_b"], ((0, 0), (0, Vp - V))).astype(jnp.float32),
    }
    for l in range(num_layers):
        prep["wih"].append(
            _reorder_ifgo_to_ifog(params[f"wih_{l}"]).astype(jnp.bfloat16))
        prep["whh"].append(
            _reorder_ifgo_to_ifog(params[f"whh_{l}"]).astype(jnp.bfloat16))
        prep["b"].append(
            _reorder_ifgo_to_ifog(params[f"b_{l}"]).astype(jnp.float32))
    return prep


# ------------------------------ model wrapper ---------------------------------
def char_rnn_forward(prep, x_ids, hidden, *, num_layers, vocab_size):
    """Equivalent of CharRNNModel.forward for rnn_model='LSTM'.

    x_ids : [B, T] int32 token ids
    hidden: (h, c) each [L, B, H] f32
    returns (logits [B, T, V] f32, (h [L,B,H], c [L,B,H]) f32)
    """
    h0, c0 = hidden
    B, T = x_ids.shape
    H = prep["emb"].shape[1]
    V = vocab_size
    Bp = _round_up(max(B, 8), 8)          # pad batch to >= 8 sublanes

    # Embedding gather (bf16 table) + batch padding stay in plain-JAX glue.
    emb = jnp.take(prep["emb"], x_ids, axis=0)            # [B, T, H] bf16
    x = jnp.transpose(emb, (1, 0, 2))                     # time-major [T, B, H]
    if Bp != B:
        x = jnp.pad(x, ((0, 0), (0, Bp - B), (0, 0)))
        h0 = jnp.pad(h0, ((0, 0), (0, Bp - B), (0, 0)))
        c0 = jnp.pad(c0, ((0, 0), (0, Bp - B), (0, 0)))

    h_out, c_out = [], []
    for l in range(num_layers):
        # TODO(synk): inter-layer dropout omitted (keep_prob=1.0 / inference).
        x, hT, cT = lstm_layer(x, prep["wih"][l], prep["whh"][l], prep["b"][l],
                               h0[l], c0[l])
        h_out.append(hT)
        c_out.append(cT)

    # fc1: transpose only the small bf16 activation to batch-major; the kernel
    # writes batch-first logits with lane-dense (Vp multiple of 128) stores, so
    # no transpose pass ever touches the [B,T,Vp] logits.
    xb = jnp.transpose(x, (1, 0, 2))                      # [Bp, T, H] bf16
    logits = fc_logits(xb, prep["fc_w"], prep["fc_b"])    # [Bp, T, Vp] f32
    logits = logits[:B, :, :V]                            # [B, T, V]

    hT = jnp.stack(h_out)[:, :B]
    cT = jnp.stack(c_out)[:, :B]
    return logits, (hT, cT)


def init_params(key, vocab_size, rnn_size, num_layers):
    """Parameters stored in PyTorch layout/order (transposed to [in, 4H])."""
    params = {}
    k_emb, k_rnn, k_fc = jax.random.split(key, 3)
    # nn.Embedding default init: N(0, 1)
    params["embedding"] = jax.random.normal(
        k_emb, (vocab_size, rnn_size), jnp.float32)

    bound = 1.0 / jnp.sqrt(rnn_size)
    rnn_keys = jax.random.split(k_rnn, num_layers)
    for l in range(num_layers):
        k1, k2, k3, k4 = jax.random.split(rnn_keys[l], 4)
        in_size = rnn_size  # rnn_size -> rnn_size for every layer
        # stored transposed relative to PyTorch: [in, 4H] / [H, 4H],
        # gate order (i, f, g, o) like nn.LSTM.
        params[f"wih_{l}"] = jax.random.uniform(
            k1, (in_size, 4 * rnn_size), jnp.float32, -bound, bound)
        params[f"whh_{l}"] = jax.random.uniform(
            k2, (rnn_size, 4 * rnn_size), jnp.float32, -bound, bound)
        b_ih = jax.random.uniform(
            k3, (1, 4 * rnn_size), jnp.float32, -bound, bound)
        b_hh = jax.random.uniform(
            k4, (1, 4 * rnn_size), jnp.float32, -bound, bound)
        params[f"b_{l}"] = b_ih + b_hh

    kf1, kf2 = jax.random.split(k_fc)
    params["fc_w"] = jax.random.uniform(
        kf1, (rnn_size, vocab_size), jnp.float32, -bound, bound)
    params["fc_b"] = jax.random.uniform(
        kf2, (1, vocab_size), jnp.float32, -bound, bound)
    return params


if __name__ == "__main__":
    # config: vocab_size=64, rnn_size=32, num_layers=2, rnn_model='LSTM',
    #         keep_prob=1.0; batch=2, seq=8
    B, T, H, V, L = 2, 8, 32, 64, 2

    key = jax.random.PRNGKey(0)
    k_params, k_x = jax.random.split(key)
    params = init_params(k_params, vocab_size=V, rnn_size=H, num_layers=L)

    # One-time parameter prep (gate reorder / bf16 cast / vocab pad) — outside jit.
    prep = prepare_params(params, num_layers=L, vocab_size=V)
    prep = jax.tree_util.tree_map(jnp.asarray, prep)

    x_ids = jax.random.randint(k_x, (B, T), 0, V, dtype=jnp.int32)
    # init_hidden(batch_size) -> zeros
    h0 = jnp.zeros((L, B, H), jnp.float32)
    c0 = jnp.zeros((L, B, H), jnp.float32)

    fwd = jax.jit(functools.partial(char_rnn_forward,
                                    num_layers=L, vocab_size=V))
    logits, (hT, cT) = fwd(prep, x_ids, (h0, c0))
    jax.block_until_ready((logits, hT, cT))

    assert logits.shape == (B, T, V)
    assert hT.shape == (L, B, H) and cT.shape == (L, B, H)
    assert bool(jnp.all(jnp.isfinite(logits)))
    print("KERNEL_OK")
</pallas_src>

<mosaic_0001>
module attributes {stable_mosaic.version = 11 : i64} {
  func.func @fc_kernel(%arg0: i32, %arg1: i32, %arg2: i32, %arg3: memref<1x8x32xbf16, #tpu.memory_space<vmem>>, %arg4: memref<32x128xbf16, #tpu.memory_space<vmem>>, %arg5: memref<1x128xf32, #tpu.memory_space<vmem>>, %arg6: memref<1x8x128xf32, #tpu.memory_space<vmem>>) attributes {dimension_semantics = [#tpu.dimension_semantics<parallel>, #tpu.dimension_semantics<parallel>, #tpu.dimension_semantics<parallel>], iteration_bounds = array<i64: 8, 1, 1>, scalar_prefetch = 0 : i64, scratch_operands = 0 : i64, tpu.core_type = #tpu.core_type<tc>, window_params = [{transform_indices = @transform_0, window_bounds = array<i64: 1, 8, 32>}, {transform_indices = @transform_1, window_bounds = array<i64: 32, 128>}, {transform_indices = @transform_2, window_bounds = array<i64: 1, 128>}, {transform_indices = @transform_3, window_bounds = array<i64: 1, 8, 128>}]} {
    %c0 = arith.constant 0 : index
    %c0_0 = arith.constant 0 : index
    %c0_1 = arith.constant 0 : index
    %0 = vector.load %arg3[%c0, %c0_0, %c0_1] : memref<1x8x32xbf16, #tpu.memory_space<vmem>>, vector<1x8x32xbf16>
    %1 = vector.shape_cast %0 : vector<1x8x32xbf16> to vector<8x32xbf16>
    %c0_2 = arith.constant 0 : index
    %c0_3 = arith.constant 0 : index
    %2 = vector.load %arg4[%c0_2, %c0_3] : memref<32x128xbf16, #tpu.memory_space<vmem>>, vector<32x128xbf16>
    %cst = arith.constant dense<0.000000e+00> : vector<8x128xf32>
    %3 = tpu.matmul %1, %2, %cst {dimension_numbers = #tpu.dot_dimension_numbers<[1], [0], [0], [1], [0, 0, 1, 1], [], []>} : vector<8x32xbf16>, vector<32x128xbf16>, vector<8x128xf32> -> vector<8x128xf32>
    %c0_4 = arith.constant 0 : index
    %c0_5 = arith.constant 0 : index
    %4 = vector.load %arg5[%c0_4, %c0_5] : memref<1x128xf32, #tpu.memory_space<vmem>>, vector<1x128xf32>
    %5 = vector.broadcast %4 : vector<1x128xf32> to vector<8x128xf32>
    %6 = arith.addf %3, %5 : vector<8x128xf32>
    %c0_6 = arith.constant 0 : index
    %c0_7 = arith.constant 0 : index
    %c0_8 = arith.constant 0 : index
    %7 = vector.load %arg6[%c0_6, %c0_7, %c0_8] : memref<1x8x128xf32, #tpu.memory_space<vmem>>, vector<1x8x128xf32>
    %8 = vector.shape_cast %7 : vector<1x8x128xf32> to vector<8x128xf32>
    %9 = vector.shape_cast %6 : vector<8x128xf32> to vector<1x8x128xf32>
    tpu.vector_store %arg6[%c0_6, %c0_7, %c0_8], %9 {strides = array<i32>} : memref<1x8x128xf32, #tpu.memory_space<vmem>>, vector<1x8x128xf32>,
    return
  }
  func.func @transform_0(%arg0: i32, %arg1: i32, %arg2: i32) -> (i32, i32, i32) {
    %c0_i32 = arith.constant 0 : i32
    %c0_i32_0 = arith.constant 0 : i32
    return %arg0, %arg1, %c0_i32 : i32, i32, i32
  }
  func.func @transform_1(%arg0: i32, %arg1: i32, %arg2: i32) -> (i32, i32) {
    %c0_i32 = arith.constant 0 : i32
    %c0_i32_0 = arith.constant 0 : i32
    return %c0_i32, %arg2 : i32, i32
  }
  func.func @transform_2(%arg0: i32, %arg1: i32, %arg2: i32) -> (i32, i32) {
    %c0_i32 = arith.constant 0 : i32
    %c0_i32_0 = arith.constant 0 : i32
    return %c0_i32, %arg2 : i32, i32
  }
  func.func @transform_3(%arg0: i32, %arg1: i32, %arg2: i32) -> (i32, i32, i32) {
    %c0_i32 = arith.constant 0 : i32
    return %arg0, %arg1, %arg2 : i32, i32, i32
  }
}

module attributes {stable_mosaic.version = 11 : i64} {
  func.func @lstm_fused_kernel(%arg0: i32, %arg1: i32, %arg2: memref<8x8x32xbf16, #tpu.memory_space<vmem>>, %arg3: memref<32x128xbf16, #tpu.memory_space<vmem>>, %arg4: memref<32x128xbf16, #tpu.memory_space<vmem>>, %arg5: memref<1x128xf32, #tpu.memory_space<vmem>>, %arg6: memref<8x32xf32, #tpu.memory_space<vmem>>, %arg7: memref<8x32xf32, #tpu.memory_space<vmem>>, %arg8: memref<8x8x32xbf16, #tpu.memory_space<vmem>>, %arg9: memref<8x32xf32, #tpu.memory_space<vmem>>, %arg10: memref<8x32xf32, #tpu.memory_space<vmem>>, %arg11: memref<8x8x128xf32, #tpu.memory_space<vmem>>, %arg12: memref<8x32xf32, #tpu.memory_space<vmem>>, %arg13: memref<8x32xf32, #tpu.memory_space<vmem>>, %arg14: memref<8x32xbf16, #tpu.memory_space<vmem>>) attributes {dimension_semantics = [#tpu.dimension_semantics<parallel>, #tpu.dimension_semantics<arbitrary>], iteration_bounds = array<i64: 1, 1>, scalar_prefetch = 0 : i64, scratch_operands = 4 : i64, tpu.core_type = #tpu.core_type<tc>, window_params = [{transform_indices = @transform_0, window_bounds = array<i64: 8, 8, 32>}, {pipeline_mode = #tpu.pipeline_mode<synchronous>, transform_indices = @transform_1, window_bounds = array<i64: 32, 128>}, {pipeline_mode = #tpu.pipeline_mode<synchronous>, transform_indices = @transform_2, window_bounds = array<i64: 32, 128>}, {pipeline_mode = #tpu.pipeline_mode<synchronous>, transform_indices = @transform_3, window_bounds = array<i64: 1, 128>}, {transform_indices = @transform_4, window_bounds = array<i64: 8, 32>}, {transform_indices = @transform_5, window_bounds = array<i64: 8, 32>}, {transform_indices = @transform_6, window_bounds = array<i64: 8, 8, 32>}, {transform_indices = @transform_7, window_bounds = array<i64: 8, 32>}, {transform_indices = @transform_8, window_bounds = array<i64: 8, 32>}]} {
    %c0_i32 = arith.constant 0 : i32
    %0 = arith.cmpi eq, %arg1, %c0_i32 : i32
    %1 = arith.extui %0 : i1 to i32
    %c0_i32_0 = arith.constant 0 : i32
    %2 = arith.cmpi ne, %1, %c0_i32_0 : i32
    scf.if %2 {
      %c0_213 = arith.constant 0 : index
      %c0_214 = arith.constant 0 : index
      %335 = vector.load %arg6[%c0_213, %c0_214] : memref<8x32xf32, #tpu.memory_space<vmem>>, vector<8x32xf32>
      %c0_215 = arith.constant 0 : index
      %c0_216 = arith.constant 0 : index
      %336 = vector.load %arg12[%c0_215, %c0_216] : memref<8x32xf32, #tpu.memory_space<vmem>>, vector<8x32xf32>
      tpu.vector_store %arg12[%c0_215, %c0_216], %335 {strides = array<i32>} : memref<8x32xf32, #tpu.memory_space<vmem>>, vector<8x32xf32>,
      %c0_217 = arith.constant 0 : index
      %c0_218 = arith.constant 0 : index
      %337 = vector.load %arg7[%c0_217, %c0_218] : memref<8x32xf32, #tpu.memory_space<vmem>>, vector<8x32xf32>
      %c0_219 = arith.constant 0 : index
      %c0_220 = arith.constant 0 : index
      %338 = vector.load %arg13[%c0_219, %c0_220] : memref<8x32xf32, #tpu.memory_space<vmem>>, vector<8x32xf32>
      tpu.vector_store %arg13[%c0_219, %c0_220], %337 {strides = array<i32>} : memref<8x32xf32, #tpu.memory_space<vmem>>, vector<8x32xf32>,
      %c0_221 = arith.constant 0 : index
      %c0_222 = arith.constant 0 : index
      %339 = vector.load %arg6[%c0_221, %c0_222] : memref<8x32xf32, #tpu.memory_space<vmem>>, vector<8x32xf32>
      %340 = arith.truncf %339 : vector<8x32xf32> to vector<8x32xbf16>
      %c0_223 = arith.constant 0 : index
      %c0_224 = arith.constant 0 : index
      %341 = vector.load %arg14[%c0_223, %c0_224] : memref<8x32xbf16, #tpu.memory_space<vmem>>, vector<8x32xbf16>
      tpu.vector_store %arg14[%c0_223, %c0_224], %340 {strides = array<i32>} : memref<8x32xbf16, #tpu.memory_space<vmem>>, vector<8x32xbf16>,
    } else {
    }
    %c0 = arith.constant 0 : index
    %c0_1 = arith.constant 0 : index
    %3 = vector.load %arg5[%c0, %c0_1] : memref<1x128xf32, #tpu.memory_space<vmem>>, vector<1x128xf32>
    %c0_2 = arith.constant 0 : index
    %c0_3 = arith.constant 0 : index
    %c0_4 = arith.constant 0 : index
    %4 = vector.load %arg2[%c0_2, %c0_3, %c0_4] : memref<8x8x32xbf16, #tpu.memory_space<vmem>>, vector<1x8x32xbf16>
    %5 = vector.shape_cast %4 : vector<1x8x32xbf16> to vector<8x32xbf16>
    %c0_5 = arith.constant 0 : index
    %c0_6 = arith.constant 0 : index
    %6 = vector.load %arg3[%c0_5, %c0_6] : memref<32x128xbf16, #tpu.memory_space<vmem>>, vector<32x128xbf16>
    %cst = arith.constant dense<0.000000e+00> : vector<8x128xf32>
    %7 = tpu.matmul %5, %6, %cst {dimension_numbers = #tpu.dot_dimension_numbers<[1], [0], [0], [1], [0, 0, 1, 1], [], []>} : vector<8x32xbf16>, vector<32x128xbf16>, vector<8x128xf32> -> vector<8x128xf32>
    %8 = vector.broadcast %3 : vector<1x128xf32> to vector<8x128xf32>
    %9 = arith.addf %7, %8 : vector<8x128xf32>
    %c0_7 = arith.constant 0 : index
    %c0_8 = arith.constant 0 : index
    %c0_9 = arith.constant 0 : index
    %10 = vector.load %arg11[%c0_7, %c0_8, %c0_9] : memref<8x8x128xf32, #tpu.memory_space<vmem>>, vector<1x8x128xf32>
    %11 = vector.shape_cast %10 : vector<1x8x128xf32> to vector<8x128xf32>
    %12 = vector.shape_cast %9 : vector<8x128xf32> to vector<1x8x128xf32>
    tpu.vector_store %arg11[%c0_7, %c0_8, %c0_9], %12 {strides = array<i32>} : memref<8x8x128xf32, #tpu.memory_space<vmem>>, vector<1x8x128xf32>,
    %c1 = arith.constant 1 : index
    %c0_10 = arith.constant 0 : index
    %c0_11 = arith.constant 0 : index
    %13 = vector.load %arg2[%c1, %c0_10, %c0_11] : memref<8x8x32xbf16, #tpu.memory_space<vmem>>, vector<1x8x32xbf16>
    %14 = vector.shape_cast %13 : vector<1x8x32xbf16> to vector<8x32xbf16>
    %c0_12 = arith.constant 0 : index
    %c0_13 = arith.constant 0 : index
    %15 = vector.load %arg3[%c0_12, %c0_13] : memref<32x128xbf16, #tpu.memory_space<vmem>>, vector<32x128xbf16>
    %cst_14 = arith.constant dense<0.000000e+00> : vector<8x128xf32>
    %16 = tpu.matmul %14, %15, %cst_14 {dimension_numbers = #tpu.dot_dimension_numbers<[1], [0], [0], [1], [0, 0, 1, 1], [], []>} : vector<8x32xbf16>, vector<32x128xbf16>, vector<8x128xf32> -> vector<8x128xf32>
    %17 = vector.broadcast %3 : vector<1x128xf32> to vector<8x128xf32>
    %18 = arith.addf %16, %17 : vector<8x128xf32>
    %c1_15 = arith.constant 1 : index
    %c0_16 = arith.constant 0 : index
    %c0_17 = arith.constant 0 : index
    %19 = vector.load %arg11[%c1_15, %c0_16, %c0_17] : memref<8x8x128xf32, #tpu.memory_space<vmem>>, vector<1x8x128xf32>
    %20 = vector.shape_cast %19 : vector<1x8x128xf32> to vector<8x128xf32>
    %21 = vector.shape_cast %18 : vector<8x128xf32> to vector<1x8x128xf32>
    tpu.vector_store %arg11[%c1_15, %c0_16, %c0_17], %21 {strides = array<i32>} : memref<8x8x128xf32, #tpu.memory_space<vmem>>, vector<1x8x128xf32>,
    %c2 = arith.constant 2 : index
    %c0_18 = arith.constant 0 : index
    %c0_19 = arith.constant 0 : index
    %22 = vector.load %arg2[%c2, %c0_18, %c0_19] : memref<8x8x32xbf16, #tpu.memory_space<vmem>>, vector<1x8x32xbf16>
    %23 = vector.shape_cast %22 : vector<1x8x32xbf16> to vector<8x32xbf16>
    %c0_20 = arith.constant 0 : index
    %c0_21 = arith.constant 0 : index
    %24 = vector.load %arg3[%c0_20, %c0_21] : memref<32x128xbf16, #tpu.memory_space<vmem>>, vector<32x128xbf16>
    %cst_22 = arith.constant dense<0.000000e+00> : vector<8x128xf32>
    %25 = tpu.matmul %23, %24, %cst_22 {dimension_numbers = #tpu.dot_dimension_numbers<[1], [0], [0], [1], [0, 0, 1, 1], [], []>} : vector<8x32xbf16>, vector<32x128xbf16>, vector<8x128xf32> -> vector<8x128xf32>
    %26 = vector.broadcast %3 : vector<1x128xf32> to vector<8x128xf32>
    %27 = arith.addf %25, %26 : vector<8x128xf32>
    %c2_23 = arith.constant 2 : index
    %c0_24 = arith.constant 0 : index
    %c0_25 = arith.constant 0 : index
    %28 = vector.load %arg11[%c2_23, %c0_24, %c0_25] : memref<8x8x128xf32, #tpu.memory_space<vmem>>, vector<1x8x128xf32>
    %29 = vector.shape_cast %28 : vector<1x8x128xf32> to vector<8x128xf32>
    %30 = vector.shape_cast %27 : vector<8x128xf32> to vector<1x8x128xf32>
    tpu.vector_store %arg11[%c2_23, %c0_24, %c0_25], %30 {strides = array<i32>} : memref<8x8x128xf32, #tpu.memory_space<vmem>>, vector<1x8x128xf32>,
    %c3 = arith.constant 3 : index
    %c0_26 = arith.constant 0 : index
    %c0_27 = arith.constant 0 : index
    %31 = vector.load %arg2[%c3, %c0_26, %c0_27] : memref<8x8x32xbf16, #tpu.memory_space<vmem>>, vector<1x8x32xbf16>
    %32 = vector.shape_cast %31 : vector<1x8x32xbf16> to vector<8x32xbf16>
    %c0_28 = arith.constant 0 : index
    %c0_29 = arith.constant 0 : index
    %33 = vector.load %arg3[%c0_28, %c0_29] : memref<32x128xbf16, #tpu.memory_space<vmem>>, vector<32x128xbf16>
    %cst_30 = arith.constant dense<0.000000e+00> : vector<8x128xf32>
    %34 = tpu.matmul %32, %33, %cst_30 {dimension_numbers = #tpu.dot_dimension_numbers<[1], [0], [0], [1], [0, 0, 1, 1], [], []>} : vector<8x32xbf16>, vector<32x128xbf16>, vector<8x128xf32> -> vector<8x128xf32>
    %35 = vector.broadcast %3 : vector<1x128xf32> to vector<8x128xf32>
    %36 = arith.addf %34, %35 : vector<8x128xf32>
    %c3_31 = arith.constant 3 : index
    %c0_32 = arith.constant 0 : index
    %c0_33 = arith.constant 0 : index
    %37 = vector.load %arg11[%c3_31, %c0_32, %c0_33] : memref<8x8x128xf32, #tpu.memory_space<vmem>>, vector<1x8x128xf32>
    %38 = vector.shape_cast %37 : vector<1x8x128xf32> to vector<8x128xf32>
    %39 = vector.shape_cast %36 : vector<8x128xf32> to vector<1x8x128xf32>
    tpu.vector_store %arg11[%c3_31, %c0_32, %c0_33], %39 {strides = array<i32>} : memref<8x8x128xf32, #tpu.memory_space<vmem>>, vector<1x8x128xf32>,
    %c4 = arith.constant 4 : index
    %c0_34 = arith.constant 0 : index
    %c0_35 = arith.constant 0 : index
    %40 = vector.load %arg2[%c4, %c0_34, %c0_35] : memref<8x8x32xbf16, #tpu.memory_space<vmem>>, vector<1x8x32xbf16>
    %41 = vector.shape_cast %40 : vector<1x8x32xbf16> to vector<8x32xbf16>
    %c0_36 = arith.constant 0 : index
    %c0_37 = arith.constant 0 : index
    %42 = vector.load %arg3[%c0_36, %c0_37] : memref<32x128xbf16, #tpu.memory_space<vmem>>, vector<32x128xbf16>
    %cst_38 = arith.constant dense<0.000000e+00> : vector<8x128xf32>
    %43 = tpu.matmul %41, %42, %cst_38 {dimension_numbers = #tpu.dot_dimension_numbers<[1], [0], [0], [1], [0, 0, 1, 1], [], []>} : vector<8x32xbf16>, vector<32x128xbf16>, vector<8x128xf32> -> vector<8x128xf32>
    %44 = vector.broadcast %3 : vector<1x128xf32> to vector<8x128xf32>
    %45 = arith.addf %43, %44 : vector<8x128xf32>
    %c4_39 = arith.constant 4 : index
    %c0_40 = arith.constant 0 : index
    %c0_41 = arith.constant 0 : index
    %46 = vector.load %arg11[%c4_39, %c0_40, %c0_41] : memref<8x8x128xf32, #tpu.memory_space<vmem>>, vector<1x8x128xf32>
    %47 = vector.shape_cast %46 : vector<1x8x128xf32> to vector<8x128xf32>
    %48 = vector.shape_cast %45 : vector<8x128xf32> to vector<1x8x128xf32>
    tpu.vector_store %arg11[%c4_39, %c0_40, %c0_41], %48 {strides = array<i32>} : memref<8x8x128xf32, #tpu.memory_space<vmem>>, vector<1x8x128xf32>,
    %c5 = arith.constant 5 : index
    %c0_42 = arith.constant 0 : index
    %c0_43 = arith.constant 0 : index
    %49 = vector.load %arg2[%c5, %c0_42, %c0_43] : memref<8x8x32xbf16, #tpu.memory_space<vmem>>, vector<1x8x32xbf16>
    %50 = vector.shape_cast %49 : vector<1x8x32xbf16> to vector<8x32xbf16>
    %c0_44 = arith.constant 0 : index
    %c0_45 = arith.constant 0 : index
    %51 = vector.load %arg3[%c0_44, %c0_45] : memref<32x128xbf16, #tpu.memory_space<vmem>>, vector<32x128xbf16>
    %cst_46 = arith.constant dense<0.000000e+00> : vector<8x128xf32>
    %52 = tpu.matmul %50, %51, %cst_46 {dimension_numbers = #tpu.dot_dimension_numbers<[1], [0], [0], [1], [0, 0, 1, 1], [], []>} : vector<8x32xbf16>, vector<32x128xbf16>, vector<8x128xf32> -> vector<8x128xf32>
    %53 = vector.broadcast %3 : vector<1x128xf32> to vector<8x128xf32>
    %54 = arith.addf %52, %53 : vector<8x128xf32>
    %c5_47 = arith.constant 5 : index
    %c0_48 = arith.constant 0 : index
    %c0_49 = arith.constant 0 : index
    %55 = vector.load %arg11[%c5_47, %c0_48, %c0_49] : memref<8x8x128xf32, #tpu.memory_space<vmem>>, vector<1x8x128xf32>
    %56 = vector.shape_cast %55 : vector<1x8x128xf32> to vector<8x128xf32>
    %57 = vector.shape_cast %54 : vector<8x128xf32> to vector<1x8x128xf32>
    tpu.vector_store %arg11[%c5_47, %c0_48, %c0_49], %57 {strides = array<i32>} : memref<8x8x128xf32, #tpu.memory_space<vmem>>, vector<1x8x128xf32>,
    %c6 = arith.constant 6 : index
    %c0_50 = arith.constant 0 : index
    %c0_51 = arith.constant 0 : index
    %58 = vector.load %arg2[%c6, %c0_50, %c0_51] : memref<8x8x32xbf16, #tpu.memory_space<vmem>>, vector<1x8x32xbf16>
    %59 = vector.shape_cast %58 : vector<1x8x32xbf16> to vector<8x32xbf16>
    %c0_52 = arith.constant 0 : index
    %c0_53 = arith.constant 0 : index
    %60 = vector.load %arg3[%c0_52, %c0_53] : memref<32x128xbf16, #tpu.memory_space<vmem>>, vector<32x128xbf16>
    %cst_54 = arith.constant dense<0.000000e+00> : vector<8x128xf32>
    %61 = tpu.matmul %59, %60, %cst_54 {dimension_numbers = #tpu.dot_dimension_numbers<[1], [0], [0], [1], [0, 0, 1, 1], [], []>} : vector<8x32xbf16>, vector<32x128xbf16>, vector<8x128xf32> -> vector<8x128xf32>
    %62 = vector.broadcast %3 : vector<1x128xf32> to vector<8x128xf32>
    %63 = arith.addf %61, %62 : vector<8x128xf32>
    %c6_55 = arith.constant 6 : index
    %c0_56 = arith.constant 0 : index
    %c0_57 = arith.constant 0 : index
    %64 = vector.load %arg11[%c6_55, %c0_56, %c0_57] : memref<8x8x128xf32, #tpu.memory_space<vmem>>, vector<1x8x128xf32>
    %65 = vector.shape_cast %64 : vector<1x8x128xf32> to vector<8x128xf32>
    %66 = vector.shape_cast %63 : vector<8x128xf32> to vector<1x8x128xf32>
    tpu.vector_store %arg11[%c6_55, %c0_56, %c0_57], %66 {strides = array<i32>} : memref<8x8x128xf32, #tpu.memory_space<vmem>>, vector<1x8x128xf32>,
    %c7 = arith.constant 7 : index
    %c0_58 = arith.constant 0 : index
    %c0_59 = arith.constant 0 : index
    %67 = vector.load %arg2[%c7, %c0_58, %c0_59] : memref<8x8x32xbf16, #tpu.memory_space<vmem>>, vector<1x8x32xbf16>
    %68 = vector.shape_cast %67 : vector<1x8x32xbf16> to vector<8x32xbf16>
    %c0_60 = arith.constant 0 : index
    %c0_61 = arith.constant 0 : index
    %69 = vector.load %arg3[%c0_60, %c0_61] : memref<32x128xbf16, #tpu.memory_space<vmem>>, vector<32x128xbf16>
    %cst_62 = arith.constant dense<0.000000e+00> : vector<8x128xf32>
    %70 = tpu.matmul %68, %69, %cst_62 {dimension_numbers = #tpu.dot_dimension_numbers<[1], [0], [0], [1], [0, 0, 1, 1], [], []>} : vector<8x32xbf16>, vector<32x128xbf16>, vector<8x128xf32> -> vector<8x128xf32>
    %71 = vector.broadcast %3 : vector<1x128xf32> to vector<8x128xf32>
    %72 = arith.addf %70, %71 : vector<8x128xf32>
    %c7_63 = arith.constant 7 : index
    %c0_64 = arith.constant 0 : index
    %c0_65 = arith.constant 0 : index
    %73 = vector.load %arg11[%c7_63, %c0_64, %c0_65] : memref<8x8x128xf32, #tpu.memory_space<vmem>>, vector<1x8x128xf32>
    %74 = vector.shape_cast %73 : vector<1x8x128xf32> to vector<8x128xf32>
    %75 = vector.shape_cast %72 : vector<8x128xf32> to vector<1x8x128xf32>
    tpu.vector_store %arg11[%c7_63, %c0_64, %c0_65], %75 {strides = array<i32>} : memref<8x8x128xf32, #tpu.memory_space<vmem>>, vector<1x8x128xf32>,
    %c0_i32_66 = arith.constant 0 : i32
    %76 = arith.index_cast %c0_i32_66 : i32 to index
    %c0_67 = arith.constant 0 : index
    %c0_68 = arith.constant 0 : index
    %77 = vector.load %arg11[%76, %c0_67, %c0_68] : memref<8x8x128xf32, #tpu.memory_space<vmem>>, vector<1x8x128xf32>
    %78 = vector.shape_cast %77 : vector<1x8x128xf32> to vector<8x128xf32>
    %c0_69 = arith.constant 0 : index
    %c0_70 = arith.constant 0 : index
    %79 = vector.load %arg14[%c0_69, %c0_70] : memref<8x32xbf16, #tpu.memory_space<vmem>>, vector<8x32xbf16>
    %c0_71 = arith.constant 0 : index
    %c0_72 = arith.constant 0 : index
    %80 = vector.load %arg4[%c0_71, %c0_72] : memref<32x128xbf16, #tpu.memory_space<vmem>>, vector<32x128xbf16>
    %cst_73 = arith.constant dense<0.000000e+00> : vector<8x128xf32>
    %81 = tpu.matmul %79, %80, %cst_73 {dimension_numbers = #tpu.dot_dimension_numbers<[1], [0], [0], [1], [0, 0, 1, 1], [], []>} : vector<8x32xbf16>, vector<32x128xbf16>, vector<8x128xf32> -> vector<8x128xf32>
    %82 = arith.addf %78, %81 : vector<8x128xf32>
    %83 = vector.extract_strided_slice %82 {offsets = [0, 0], sizes = [8, 96], strides = [1, 1]} : vector<8x128xf32> to vector<8x96xf32>
    %84 = arith.negf %83 : vector<8x96xf32>
    %85 = math.exp %84 : vector<8x96xf32>
    %cst_74 = arith.constant 1.000000e+00 : f32
    %86 = vector.broadcast %cst_74 : f32 to vector<8x96xf32>
    %87 = arith.addf %86, %85 : vector<8x96xf32>
    %88 = arith.divf %86, %87 : vector<8x96xf32>
    %89 = vector.extract_strided_slice %82 {offsets = [0, 96], sizes = [8, 32], strides = [1, 1]} : vector<8x128xf32> to vector<8x32xf32>
    %90 = math.tanh %89 : vector<8x32xf32>
    %91 = vector.extract_strided_slice %88 {offsets = [0, 0], sizes = [8, 32], strides = [1, 1]} : vector<8x96xf32> to vector<8x32xf32>
    %92 = vector.extract_strided_slice %88 {offsets = [0, 32], sizes = [8, 32], strides = [1, 1]} : vector<8x96xf32> to vector<8x32xf32>
    %93 = vector.extract_strided_slice %88 {offsets = [0, 64], sizes = [8, 32], strides = [1, 1]} : vector<8x96xf32> to vector<8x32xf32>
    %c0_75 = arith.constant 0 : index
    %c0_76 = arith.constant 0 : index
    %94 = vector.load %arg13[%c0_75, %c0_76] : memref<8x32xf32, #tpu.memory_space<vmem>>, vector<8x32xf32>
    %95 = arith.mulf %92, %94 : vector<8x32xf32>
    %96 = arith.mulf %91, %90 : vector<8x32xf32>
    %97 = arith.addf %95, %96 : vector<8x32xf32>
    %98 = math.tanh %97 : vector<8x32xf32>
    %99 = arith.mulf %93, %98 : vector<8x32xf32>
    %c0_77 = arith.constant 0 : index
    %c0_78 = arith.constant 0 : index
    %100 = vector.load %arg13[%c0_77, %c0_78] : memref<8x32xf32, #tpu.memory_space<vmem>>, vector<8x32xf32>
    tpu.vector_store %arg13[%c0_77, %c0_78], %97 {strides = array<i32>} : memref<8x32xf32, #tpu.memory_space<vmem>>, vector<8x32xf32>,
    %c0_79 = arith.constant 0 : index
    %c0_80 = arith.constant 0 : index
    %101 = vector.load %arg12[%c0_79, %c0_80] : memref<8x32xf32, #tpu.memory_space<vmem>>, vector<8x32xf32>
    tpu.vector_store %arg12[%c0_79, %c0_80], %99 {strides = array<i32>} : memref<8x32xf32, #tpu.memory_space<vmem>>, vector<8x32xf32>,
    %102 = arith.truncf %99 : vector<8x32xf32> to vector<8x32xbf16>
    %c0_81 = arith.constant 0 : index
    %c0_82 = arith.constant 0 : index
    %103 = vector.load %arg14[%c0_81, %c0_82] : memref<8x32xbf16, #tpu.memory_space<vmem>>, vector<8x32xbf16>
    tpu.vector_store %arg14[%c0_81, %c0_82], %102 {strides = array<i32>} : memref<8x32xbf16, #tpu.memory_space<vmem>>, vector<8x32xbf16>,
    %104 = arith.index_cast %c0_i32_66 : i32 to index
    %c0_83 = arith.constant 0 : index
    %c0_84 = arith.constant 0 : index
    %105 = vector.load %arg8[%104, %c0_83, %c0_84] : memref<8x8x32xbf16, #tpu.memory_space<vmem>>, vector<1x8x32xbf16>
    %106 = vector.shape_cast %105 : vector<1x8x32xbf16> to vector<8x32xbf16>
    %107 = vector.shape_cast %102 : vector<8x32xbf16> to vector<1x8x32xbf16>
    tpu.vector_store %arg8[%104, %c0_83, %c0_84], %107 {strides = array<i32>} : memref<8x8x32xbf16, #tpu.memory_space<vmem>>, vector<1x8x32xbf16>,
    %c1_i32 = arith.constant 1 : i32
    %108 = arith.index_cast %c1_i32 : i32 to index
    %c0_85 = arith.constant 0 : index
    %c0_86 = arith.constant 0 : index
    %109 = vector.load %arg11[%108, %c0_85, %c0_86] : memref<8x8x128xf32, #tpu.memory_space<vmem>>, vector<1x8x128xf32>
    %110 = vector.shape_cast %109 : vector<1x8x128xf32> to vector<8x128xf32>
    %c0_87 = arith.constant 0 : index
    %c0_88 = arith.constant 0 : index
    %111 = vector.load %arg14[%c0_87, %c0_88] : memref<8x32xbf16, #tpu.memory_space<vmem>>, vector<8x32xbf16>
    %c0_89 = arith.constant 0 : index
    %c0_90 = arith.constant 0 : index
    %112 = vector.load %arg4[%c0_89, %c0_90] : memref<32x128xbf16, #tpu.memory_space<vmem>>, vector<32x128xbf16>
    %cst_91 = arith.constant dense<0.000000e+00> : vector<8x128xf32>
    %113 = tpu.matmul %111, %112, %cst_91 {dimension_numbers = #tpu.dot_dimension_numbers<[1], [0], [0], [1], [0, 0, 1, 1], [], []>} : vector<8x32xbf16>, vector<32x128xbf16>, vector<8x128xf32> -> vector<8x128xf32>
    %114 = arith.addf %110, %113 : vector<8x128xf32>
    %115 = vector.extract_strided_slice %114 {offsets = [0, 0], sizes = [8, 96], strides = [1, 1]} : vector<8x128xf32> to vector<8x96xf32>
    %116 = arith.negf %115 : vector<8x96xf32>
    %117 = math.exp %116 : vector<8x96xf32>
    %cst_92 = arith.constant 1.000000e+00 : f32
    %118 = vector.broadcast %cst_92 : f32 to vector<8x96xf32>
    %119 = arith.addf %118, %117 : vector<8x96xf32>
    %120 = arith.divf %118, %119 : vector<8x96xf32>
    %121 = vector.extract_strided_slice %114 {offsets = [0, 96], sizes = [8, 32], strides = [1, 1]} : vector<8x128xf32> to vector<8x32xf32>
    %122 = math.tanh %121 : vector<8x32xf32>
    %123 = vector.extract_strided_slice %120 {offsets = [0, 0], sizes = [8, 32], strides = [1, 1]} : vector<8x96xf32> to vector<8x32xf32>
    %124 = vector.extract_strided_slice %120 {offsets = [0, 32], sizes = [8, 32], strides = [1, 1]} : vector<8x96xf32> to vector<8x32xf32>
    %125 = vector.extract_strided_slice %120 {offsets = [0, 64], sizes = [8, 32], strides = [1, 1]} : vector<8x96xf32> to vector<8x32xf32>
    %c0_93 = arith.constant 0 : index
    %c0_94 = arith.constant 0 : index
    %126 = vector.load %arg13[%c0_93, %c0_94] : memref<8x32xf32, #tpu.memory_space<vmem>>, vector<8x32xf32>
    %127 = arith.mulf %124, %126 : vector<8x32xf32>
    %128 = arith.mulf %123, %122 : vector<8x32xf32>
    %129 = arith.addf %127, %128 : vector<8x32xf32>
    %130 = math.tanh %129 : vector<8x32xf32>
    %131 = arith.mulf %125, %130 : vector<8x32xf32>
    %c0_95 = arith.constant 0 : index
    %c0_96 = arith.constant 0 : index
    %132 = vector.load %arg13[%c0_95, %c0_96] : memref<8x32xf32, #tpu.memory_space<vmem>>, vector<8x32xf32>
    tpu.vector_store %arg13[%c0_95, %c0_96], %129 {strides = array<i32>} : memref<8x32xf32, #tpu.memory_space<vmem>>, vector<8x32xf32>,
    %c0_97 = arith.constant 0 : index
    %c0_98 = arith.constant 0 : index
    %133 = vector.load %arg12[%c0_97, %c0_98] : memref<8x32xf32, #tpu.memory_space<vmem>>, vector<8x32xf32>
    tpu.vector_store %arg12[%c0_97, %c0_98], %131 {strides = array<i32>} : memref<8x32xf32, #tpu.memory_space<vmem>>, vector<8x32xf32>,
    %134 = arith.truncf %131 : vector<8x32xf32> to vector<8x32xbf16>
    %c0_99 = arith.constant 0 : index
    %c0_100 = arith.constant 0 : index
    %135 = vector.load %arg14[%c0_99, %c0_100] : memref<8x32xbf16, #tpu.memory_space<vmem>>, vector<8x32xbf16>
    tpu.vector_store %arg14[%c0_99, %c0_100], %134 {strides = array<i32>} : memref<8x32xbf16, #tpu.memory_space<vmem>>, vector<8x32xbf16>,
    %136 = arith.index_cast %c1_i32 : i32 to index
    %c0_101 = arith.constant 0 : index
    %c0_102 = arith.constant 0 : index
    %137 = vector.load %arg8[%136, %c0_101, %c0_102] : memref<8x8x32xbf16, #tpu.memory_space<vmem>>, vector<1x8x32xbf16>
    %138 = vector.shape_cast %137 : vector<1x8x32xbf16> to vector<8x32xbf16>
    %139 = vector.shape_cast %134 : vector<8x32xbf16> to vector<1x8x32xbf16>
    tpu.vector_store %arg8[%136, %c0_101, %c0_102], %139 {strides = array<i32>} : memref<8x8x32xbf16, #tpu.memory_space<vmem>>, vector<1x8x32xbf16>,
    %c2_i32 = arith.constant 2 : i32
    %140 = arith.index_cast %c2_i32 : i32 to index
    %c0_103 = arith.constant 0 : index
    %c0_104 = arith.constant 0 : index
    %141 = vector.load %arg11[%140, %c0_103, %c0_104] : memref<8x8x128xf32, #tpu.memory_space<vmem>>, vector<1x8x128xf32>
    %142 = vector.shape_cast %141 : vector<1x8x128xf32> to vector<8x128xf32>
    %c0_105 = arith.constant 0 : index
    %c0_106 = arith.constant 0 : index
    %143 = vector.load %arg14[%c0_105, %c0_106] : memref<8x32xbf16, #tpu.memory_space<vmem>>, vector<8x32xbf16>
    %c0_107 = arith.constant 0 : index
    %c0_108 = arith.constant 0 : index
    %144 = vector.load %arg4[%c0_107, %c0_108] : memref<32x128xbf16, #tpu.memory_space<vmem>>, vector<32x128xbf16>
    %cst_109 = arith.constant dense<0.000000e+00> : vector<8x128xf32>
    %145 = tpu.matmul %143, %144, %cst_109 {dimension_numbers = #tpu.dot_dimension_numbers<[1], [0], [0], [1], [0, 0, 1, 1], [], []>} : vector<8x32xbf16>, vector<32x128xbf16>, vector<8x128xf32> -> vector<8x128xf32>
    %146 = arith.addf %142, %145 : vector<8x128xf32>
    %147 = vector.extract_strided_slice %146 {offsets = [0, 0], sizes = [8, 96], strides = [1, 1]} : vector<8x128xf32> to vector<8x96xf32>
    %148 = arith.negf %147 : vector<8x96xf32>
    %149 = math.exp %148 : vector<8x96xf32>
    %cst_110 = arith.constant 1.000000e+00 : f32
    %150 = vector.broadcast %cst_110 : f32 to vector<8x96xf32>
    %151 = arith.addf %150, %149 : vector<8x96xf32>
    %152 = arith.divf %150, %151 : vector<8x96xf32>
    %153 = vector.extract_strided_slice %146 {offsets = [0, 96], sizes = [8, 32], strides = [1, 1]} : vector<8x128xf32> to vector<8x32xf32>
    %154 = math.tanh %153 : vector<8x32xf32>
    %155 = vector.extract_strided_slice %152 {offsets = [0, 0], sizes = [8, 32], strides = [1, 1]} : vector<8x96xf32> to vector<8x32xf32>
    %156 = vector.extract_strided_slice %152 {offsets = [0, 32], sizes = [8, 32], strides = [1, 1]} : vector<8x96xf32> to vector<8x32xf32>
    %157 = vector.extract_strided_slice %152 {offsets = [0, 64], sizes = [8, 32], strides = [1, 1]} : vector<8x96xf32> to vector<8x32xf32>
    %c0_111 = arith.constant 0 : index
    %c0_112 = arith.constant 0 : index
    %158 = vector.load %arg13[%c0_111, %c0_112] : memref<8x32xf32, #tpu.memory_space<vmem>>, vector<8x32xf32>
    %159 = arith.mulf %156, %158 : vector<8x32xf32>
    %160 = arith.mulf %155, %154 : vector<8x32xf32>
    %161 = arith.addf %159, %160 : vector<8x32xf32>
    %162 = math.tanh %161 : vector<8x32xf32>
    %163 = arith.mulf %157, %162 : vector<8x32xf32>
    %c0_113 = arith.constant 0 : index
    %c0_114 = arith.constant 0 : index
    %164 = vector.load %arg13[%c0_113, %c0_114] : memref<8x32xf32, #tpu.memory_space<vmem>>, vector<8x32xf32>
    tpu.vector_store %arg13[%c0_113, %c0_114], %161 {strides = array<i32>} : memref<8x32xf32, #tpu.memory_space<vmem>>, vector<8x32xf32>,
    %c0_115 = arith.constant 0 : index
    %c0_116 = arith.constant 0 : index
    %165 = vector.load %arg12[%c0_115, %c0_116] : memref<8x32xf32, #tpu.memory_space<vmem>>, vector<8x32xf32>
    tpu.vector_store %arg12[%c0_115, %c0_116], %163 {strides = array<i32>} : memref<8x32xf32, #tpu.memory_space<vmem>>, vector<8x32xf32>,
    %166 = arith.truncf %163 : vector<8x32xf32> to vector<8x32xbf16>
    %c0_117 = arith.constant 0 : index
    %c0_118 = arith.constant 0 : index
    %167 = vector.load %arg14[%c0_117, %c0_118] : memref<8x32xbf16, #tpu.memory_space<vmem>>, vector<8x32xbf16>
    tpu.vector_store %arg14[%c0_117, %c0_118], %166 {strides = array<i32>} : memref<8x32xbf16, #tpu.memory_space<vmem>>, vector<8x32xbf16>,
    %168 = arith.index_cast %c2_i32 : i32 to index
    %c0_119 = arith.constant 0 : index
    %c0_120 = arith.constant 0 : index
    %169 = vector.load %arg8[%168, %c0_119, %c0_120] : memref<8x8x32xbf16, #tpu.memory_space<vmem>>, vector<1x8x32xbf16>
    %170 = vector.shape_cast %169 : vector<1x8x32xbf16> to vector<8x32xbf16>
    %171 = vector.shape_cast %166 : vector<8x32xbf16> to vector<1x8x32xbf16>
    tpu.vector_store %arg8[%168, %c0_119, %c0_120], %171 {strides = array<i32>} : memref<8x8x32xbf16, #tpu.memory_space<vmem>>, vector<1x8x32xbf16>,
    %c3_i32 = arith.constant 3 : i32
    %172 = arith.index_cast %c3_i32 : i32 to index
    %c0_121 = arith.constant 0 : index
    %c0_122 = arith.constant 0 : index
    %173 = vector.load %arg11[%172, %c0_121, %c0_122] : memref<8x8x128xf32, #tpu.memory_space<vmem>>, vector<1x8x128xf32>
    %174 = vector.shape_cast %173 : vector<1x8x128xf32> to vector<8x128xf32>
    %c0_123 = arith.constant 0 : index
    %c0_124 = arith.constant 0 : index
    %175 = vector.load %arg14[%c0_123, %c0_124] : memref<8x32xbf16, #tpu.memory_space<vmem>>, vector<8x32xbf16>
    %c0_125 = arith.constant 0 : index
    %c0_126 = arith.constant 0 : index
    %176 = vector.load %arg4[%c0_125, %c0_126] : memref<32x128xbf16, #tpu.memory_space<vmem>>, vector<32x128xbf16>
    %cst_127 = arith.constant dense<0.000000e+00> : vector<8x128xf32>
    %177 = tpu.matmul %175, %176, %cst_127 {dimension_numbers = #tpu.dot_dimension_numbers<[1], [0], [0], [1], [0, 0, 1, 1], [], []>} : vector<8x32xbf16>, vector<32x128xbf16>, vector<8x128xf32> -> vector<8x128xf32>
    %178 = arith.addf %174, %177 : vector<8x128xf32>
    %179 = vector.extract_strided_slice %178 {offsets = [0, 0], sizes = [8, 96], strides = [1, 1]} : vector<8x128xf32> to vector<8x96xf32>
    %180 = arith.negf %179 : vector<8x96xf32>
    %181 = math.exp %180 : vector<8x96xf32>
    %cst_128 = arith.constant 1.000000e+00 : f32
    %182 = vector.broadcast %cst_128 : f32 to vector<8x96xf32>
    %183 = arith.addf %182, %181 : vector<8x96xf32>
    %184 = arith.divf %182, %183 : vector<8x96xf32>
    %185 = vector.extract_strided_slice %178 {offsets = [0, 96], sizes = [8, 32], strides = [1, 1]} : vector<8x128xf32> to vector<8x32xf32>
    %186 = math.tanh %185 : vector<8x32xf32>
    %187 = vector.extract_strided_slice %184 {offsets = [0, 0], sizes = [8, 32], strides = [1, 1]} : vector<8x96xf32> to vector<8x32xf32>
    %188 = vector.extract_strided_slice %184 {offsets = [0, 32], sizes = [8, 32], strides = [1, 1]} : vector<8x96xf32> to vector<8x32xf32>
    %189 = vector.extract_strided_slice %184 {offsets = [0, 64], sizes = [8, 32], strides = [1, 1]} : vector<8x96xf32> to vector<8x32xf32>
    %c0_129 = arith.constant 0 : index
    %c0_130 = arith.constant 0 : index
    %190 = vector.load %arg13[%c0_129, %c0_130] : memref<8x32xf32, #tpu.memory_space<vmem>>, vector<8x32xf32>
    %191 = arith.mulf %188, %190 : vector<8x32xf32>
    %192 = arith.mulf %187, %186 : vector<8x32xf32>
    %193 = arith.addf %191, %192 : vector<8x32xf32>
    %194 = math.tanh %193 : vector<8x32xf32>
    %195 = arith.mulf %189, %194 : vector<8x32xf32>
    %c0_131 = arith.constant 0 : index
    %c0_132 = arith.constant 0 : index
    %196 = vector.load %arg13[%c0_131, %c0_132] : memref<8x32xf32, #tpu.memory_space<vmem>>, vector<8x32xf32>
    tpu.vector_store %arg13[%c0_131, %c0_132], %193 {strides = array<i32>} : memref<8x32xf32, #tpu.memory_space<vmem>>, vector<8x32xf32>,
    %c0_133 = arith.constant 0 : index
    %c0_134 = arith.constant 0 : index
    %197 = vector.load %arg12[%c0_133, %c0_134] : memref<8x32xf32, #tpu.memory_space<vmem>>, vector<8x32xf32>
    tpu.vector_store %arg12[%c0_133, %c0_134], %195 {strides = array<i32>} : memref<8x32xf32, #tpu.memory_space<vmem>>, vector<8x32xf32>,
    %198 = arith.truncf %195 : vector<8x32xf32> to vector<8x32xbf16>
    %c0_135 = arith.constant 0 : index
    %c0_136 = arith.constant 0 : index
    %199 = vector.load %arg14[%c0_135, %c0_136] : memref<8x32xbf16, #tpu.memory_space<vmem>>, vector<8x32xbf16>
    tpu.vector_store %arg14[%c0_135, %c0_136], %198 {strides = array<i32>} : memref<8x32xbf16, #tpu.memory_space<vmem>>, vector<8x32xbf16>,
    %200 = arith.index_cast %c3_i32 : i32 to index
    %c0_137 = arith.constant 0 : index
    %c0_138 = arith.constant 0 : index
    %201 = vector.load %arg8[%200, %c0_137, %c0_138] : memref<8x8x32xbf16, #tpu.memory_space<vmem>>, vector<1x8x32xbf16>
    %202 = vector.shape_cast %201 : vector<1x8x32xbf16> to vector<8x32xbf16>
    %203 = vector.shape_cast %198 : vector<8x32xbf16> to vector<1x8x32xbf16>
    tpu.vector_store %arg8[%200, %c0_137, %c0_138], %203 {strides = array<i32>} : memref<8x8x32xbf16, #tpu.memory_space<vmem>>, vector<1x8x32xbf16>,
    %c4_i32 = arith.constant 4 : i32
    %204 = arith.index_cast %c4_i32 : i32 to index
    %c0_139 = arith.constant 0 : index
    %c0_140 = arith.constant 0 : index
    %205 = vector.load %arg11[%204, %c0_139, %c0_140] : memref<8x8x128xf32, #tpu.memory_space<vmem>>, vector<1x8x128xf32>
    %206 = vector.shape_cast %205 : vector<1x8x128xf32> to vector<8x128xf32>
    %c0_141 = arith.constant 0 : index
    %c0_142 = arith.constant 0 : index
    %207 = vector.load %arg14[%c0_141, %c0_142] : memref<8x32xbf16, #tpu.memory_space<vmem>>, vector<8x32xbf16>
    %c0_143 = arith.constant 0 : index
    %c0_144 = arith.constant 0 : index
    %208 = vector.load %arg4[%c0_143, %c0_144] : memref<32x128xbf16, #tpu.memory_space<vmem>>, vector<32x128xbf16>
    %cst_145 = arith.constant dense<0.000000e+00> : vector<8x128xf32>
    %209 = tpu.matmul %207, %208, %cst_145 {dimension_numbers = #tpu.dot_dimension_numbers<[1], [0], [0], [1], [0, 0, 1, 1], [], []>} : vector<8x32xbf16>, vector<32x128xbf16>, vector<8x128xf32> -> vector<8x128xf32>
    %210 = arith.addf %206, %209 : vector<8x128xf32>
    %211 = vector.extract_strided_slice %210 {offsets = [0, 0], sizes = [8, 96], strides = [1, 1]} : vector<8x128xf32> to vector<8x96xf32>
    %212 = arith.negf %211 : vector<8x96xf32>
    %213 = math.exp %212 : vector<8x96xf32>
    %cst_146 = arith.constant 1.000000e+00 : f32
    %214 = vector.broadcast %cst_146 : f32 to vector<8x96xf32>
    %215 = arith.addf %214, %213 : vector<8x96xf32>
    %216 = arith.divf %214, %215 : vector<8x96xf32>
    %217 = vector.extract_strided_slice %210 {offsets = [0, 96], sizes = [8, 32], strides = [1, 1]} : vector<8x128xf32> to vector<8x32xf32>
    %218 = math.tanh %217 : vector<8x32xf32>
    %219 = vector.extract_strided_slice %216 {offsets = [0, 0], sizes = [8, 32], strides = [1, 1]} : vector<8x96xf32> to vector<8x32xf32>
    %220 = vector.extract_strided_slice %216 {offsets = [0, 32], sizes = [8, 32], strides = [1, 1]} : vector<8x96xf32> to vector<8x32xf32>
    %221 = vector.extract_strided_slice %216 {offsets = [0, 64], sizes = [8, 32], strides = [1, 1]} : vector<8x96xf32> to vector<8x32xf32>
    %c0_147 = arith.constant 0 : index
    %c0_148 = arith.constant 0 : index
    %222 = vector.load %arg13[%c0_147, %c0_148] : memref<8x32xf32, #tpu.memory_space<vmem>>, vector<8x32xf32>
    %223 = arith.mulf %220, %222 : vector<8x32xf32>
    %224 = arith.mulf %219, %218 : vector<8x32xf32>
    %225 = arith.addf %223, %224 : vector<8x32xf32>
    %226 = math.tanh %225 : vector<8x32xf32>
    %227 = arith.mulf %221, %226 : vector<8x32xf32>
    %c0_149 = arith.constant 0 : index
    %c0_150 = arith.constant 0 : index
    %228 = vector.load %arg13[%c0_149, %c0_150] : memref<8x32xf32, #tpu.memory_space<vmem>>, vector<8x32xf32>
    tpu.vector_store %arg13[%c0_149, %c0_150], %225 {strides = array<i32>} : memref<8x32xf32, #tpu.memory_space<vmem>>, vector<8x32xf32>,
    %c0_151 = arith.constant 0 : index
    %c0_152 = arith.constant 0 : index
    %229 = vector.load %arg12[%c0_151, %c0_152] : memref<8x32xf32, #tpu.memory_space<vmem>>, vector<8x32xf32>
    tpu.vector_store %arg12[%c0_151, %c0_152], %227 {strides = array<i32>} : memref<8x32xf32, #tpu.memory_space<vmem>>, vector<8x32xf32>,
    %230 = arith.truncf %227 : vector<8x32xf32> to vector<8x32xbf16>
    %c0_153 = arith.constant 0 : index
    %c0_154 = arith.constant 0 : index
    %231 = vector.load %arg14[%c0_153, %c0_154] : memref<8x32xbf16, #tpu.memory_space<vmem>>, vector<8x32xbf16>
    tpu.vector_store %arg14[%c0_153, %c0_154], %230 {strides = array<i32>} : memref<8x32xbf16, #tpu.memory_space<vmem>>, vector<8x32xbf16>,
    %232 = arith.index_cast %c4_i32 : i32 to index
    %c0_155 = arith.constant 0 : index
    %c0_156 = arith.constant 0 : index
    %233 = vector.load %arg8[%232, %c0_155, %c0_156] : memref<8x8x32xbf16, #tpu.memory_space<vmem>>, vector<1x8x32xbf16>
    %234 = vector.shape_cast %233 : vector<1x8x32xbf16> to vector<8x32xbf16>
    %235 = vector.shape_cast %230 : vector<8x32xbf16> to vector<1x8x32xbf16>
    tpu.vector_store %arg8[%232, %c0_155, %c0_156], %235 {strides = array<i32>} : memref<8x8x32xbf16, #tpu.memory_space<vmem>>, vector<1x8x32xbf16>,
    %c5_i32 = arith.constant 5 : i32
    %236 = arith.index_cast %c5_i32 : i32 to index
    %c0_157 = arith.constant 0 : index
    %c0_158 = arith.constant 0 : index
    %237 = vector.load %arg11[%236, %c0_157, %c0_158] : memref<8x8x128xf32, #tpu.memory_space<vmem>>, vector<1x8x128xf32>
    %238 = vector.shape_cast %237 : vector<1x8x128xf32> to vector<8x128xf32>
    %c0_159 = arith.constant 0 : index
    %c0_160 = arith.constant 0 : index
    %239 = vector.load %arg14[%c0_159, %c0_160] : memref<8x32xbf16, #tpu.memory_space<vmem>>, vector<8x32xbf16>
    %c0_161 = arith.constant 0 : index
    %c0_162 = arith.constant 0 : index
    %240 = vector.load %arg4[%c0_161, %c0_162] : memref<32x128xbf16, #tpu.memory_space<vmem>>, vector<32x128xbf16>
    %cst_163 = arith.constant dense<0.000000e+00> : vector<8x128xf32>
    %241 = tpu.matmul %239, %240, %cst_163 {dimension_numbers = #tpu.dot_dimension_numbers<[1], [0], [0], [1], [0, 0, 1, 1], [], []>} : vector<8x32xbf16>, vector<32x128xbf16>, vector<8x128xf32> -> vector<8x128xf32>
    %242 = arith.addf %238, %241 : vector<8x128xf32>
    %243 = vector.extract_strided_slice %242 {offsets = [0, 0], sizes = [8, 96], strides = [1, 1]} : vector<8x128xf32> to vector<8x96xf32>
    %244 = arith.negf %243 : vector<8x96xf32>
    %245 = math.exp %244 : vector<8x96xf32>
    %cst_164 = arith.constant 1.000000e+00 : f32
    %246 = vector.broadcast %cst_164 : f32 to vector<8x96xf32>
    %247 = arith.addf %246, %245 : vector<8x96xf32>
    %248 = arith.divf %246, %247 : vector<8x96xf32>
    %249 = vector.extract_strided_slice %242 {offsets = [0, 96], sizes = [8, 32], strides = [1, 1]} : vector<8x128xf32> to vector<8x32xf32>
    %250 = math.tanh %249 : vector<8x32xf32>
    %251 = vector.extract_strided_slice %248 {offsets = [0, 0], sizes = [8, 32], strides = [1, 1]} : vector<8x96xf32> to vector<8x32xf32>
    %252 = vector.extract_strided_slice %248 {offsets = [0, 32], sizes = [8, 32], strides = [1, 1]} : vector<8x96xf32> to vector<8x32xf32>
    %253 = vector.extract_strided_slice %248 {offsets = [0, 64], sizes = [8, 32], strides = [1, 1]} : vector<8x96xf32> to vector<8x32xf32>
    %c0_165 = arith.constant 0 : index
    %c0_166 = arith.constant 0 : index
    %254 = vector.load %arg13[%c0_165, %c0_166] : memref<8x32xf32, #tpu.memory_space<vmem>>, vector<8x32xf32>
    %255 = arith.mulf %252, %254 : vector<8x32xf32>
    %256 = arith.mulf %251, %250 : vector<8x32xf32>
    %257 = arith.addf %255, %256 : vector<8x32xf32>
    %258 = math.tanh %257 : vector<8x32xf32>
    %259 = arith.mulf %253, %258 : vector<8x32xf32>
    %c0_167 = arith.constant 0 : index
    %c0_168 = arith.constant 0 : index
    %260 = vector.load %arg13[%c0_167, %c0_168] : memref<8x32xf32, #tpu.memory_space<vmem>>, vector<8x32xf32>
    tpu.vector_store %arg13[%c0_167, %c0_168], %257 {strides = array<i32>} : memref<8x32xf32, #tpu.memory_space<vmem>>, vector<8x32xf32>,
    %c0_169 = arith.constant 0 : index
    %c0_170 = arith.constant 0 : index
    %261 = vector.load %arg12[%c0_169, %c0_170] : memref<8x32xf32, #tpu.memory_space<vmem>>, vector<8x32xf32>
    tpu.vector_store %arg12[%c0_169, %c0_170], %259 {strides = array<i32>} : memref<8x32xf32, #tpu.memory_space<vmem>>, vector<8x32xf32>,
    %262 = arith.truncf %259 : vector<8x32xf32> to vector<8x32xbf16>
    %c0_171 = arith.constant 0 : index
    %c0_172 = arith.constant 0 : index
    %263 = vector.load %arg14[%c0_171, %c0_172] : memref<8x32xbf16, #tpu.memory_space<vmem>>, vector<8x32xbf16>
    tpu.vector_store %arg14[%c0_171, %c0_172], %262 {strides = array<i32>} : memref<8x32xbf16, #tpu.memory_space<vmem>>, vector<8x32xbf16>,
    %264 = arith.index_cast %c5_i32 : i32 to index
    %c0_173 = arith.constant 0 : index
    %c0_174 = arith.constant 0 : index
    %265 = vector.load %arg8[%264, %c0_173, %c0_174] : memref<8x8x32xbf16, #tpu.memory_space<vmem>>, vector<1x8x32xbf16>
    %266 = vector.shape_cast %265 : vector<1x8x32xbf16> to vector<8x32xbf16>
    %267 = vector.shape_cast %262 : vector<8x32xbf16> to vector<1x8x32xbf16>
    tpu.vector_store %arg8[%264, %c0_173, %c0_174], %267 {strides = array<i32>} : memref<8x8x32xbf16, #tpu.memory_space<vmem>>, vector<1x8x32xbf16>,
    %c6_i32 = arith.constant 6 : i32
    %268 = arith.index_cast %c6_i32 : i32 to index
    %c0_175 = arith.constant 0 : index
    %c0_176 = arith.constant 0 : index
    %269 = vector.load %arg11[%268, %c0_175, %c0_176] : memref<8x8x128xf32, #tpu.memory_space<vmem>>, vector<1x8x128xf32>
    %270 = vector.shape_cast %269 : vector<1x8x128xf32> to vector<8x128xf32>
    %c0_177 = arith.constant 0 : index
    %c0_178 = arith.constant 0 : index
    %271 = vector.load %arg14[%c0_177, %c0_178] : memref<8x32xbf16, #tpu.memory_space<vmem>>, vector<8x32xbf16>
    %c0_179 = arith.constant 0 : index
    %c0_180 = arith.constant 0 : index
    %272 = vector.load %arg4[%c0_179, %c0_180] : memref<32x128xbf16, #tpu.memory_space<vmem>>, vector<32x128xbf16>
    %cst_181 = arith.constant dense<0.000000e+00> : vector<8x128xf32>
    %273 = tpu.matmul %271, %272, %cst_181 {dimension_numbers = #tpu.dot_dimension_numbers<[1], [0], [0], [1], [0, 0, 1, 1], [], []>} : vector<8x32xbf16>, vector<32x128xbf16>, vector<8x128xf32> -> vector<8x128xf32>
    %274 = arith.addf %270, %273 : vector<8x128xf32>
    %275 = vector.extract_strided_slice %274 {offsets = [0, 0], sizes = [8, 96], strides = [1, 1]} : vector<8x128xf32> to vector<8x96xf32>
    %276 = arith.negf %275 : vector<8x96xf32>
    %277 = math.exp %276 : vector<8x96xf32>
    %cst_182 = arith.constant 1.000000e+00 : f32
    %278 = vector.broadcast %cst_182 : f32 to vector<8x96xf32>
    %279 = arith.addf %278, %277 : vector<8x96xf32>
    %280 = arith.divf %278, %279 : vector<8x96xf32>
    %281 = vector.extract_strided_slice %274 {offsets = [0, 96], sizes = [8, 32], strides = [1, 1]} : vector<8x128xf32> to vector<8x32xf32>
    %282 = math.tanh %281 : vector<8x32xf32>
    %283 = vector.extract_strided_slice %280 {offsets = [0, 0], sizes = [8, 32], strides = [1, 1]} : vector<8x96xf32> to vector<8x32xf32>
    %284 = vector.extract_strided_slice %280 {offsets = [0, 32], sizes = [8, 32], strides = [1, 1]} : vector<8x96xf32> to vector<8x32xf32>
    %285 = vector.extract_strided_slice %280 {offsets = [0, 64], sizes = [8, 32], strides = [1, 1]} : vector<8x96xf32> to vector<8x32xf32>
    %c0_183 = arith.constant 0 : index
    %c0_184 = arith.constant 0 : index
    %286 = vector.load %arg13[%c0_183, %c0_184] : memref<8x32xf32, #tpu.memory_space<vmem>>, vector<8x32xf32>
    %287 = arith.mulf %284, %286 : vector<8x32xf32>
    %288 = arith.mulf %283, %282 : vector<8x32xf32>
    %289 = arith.addf %287, %288 : vector<8x32xf32>
    %290 = math.tanh %289 : vector<8x32xf32>
    %291 = arith.mulf %285, %290 : vector<8x32xf32>
    %c0_185 = arith.constant 0 : index
    %c0_186 = arith.constant 0 : index
    %292 = vector.load %arg13[%c0_185, %c0_186] : memref<8x32xf32, #tpu.memory_space<vmem>>, vector<8x32xf32>
    tpu.vector_store %arg13[%c0_185, %c0_186], %289 {strides = array<i32>} : memref<8x32xf32, #tpu.memory_space<vmem>>, vector<8x32xf32>,
    %c0_187 = arith.constant 0 : index
    %c0_188 = arith.constant 0 : index
    %293 = vector.load %arg12[%c0_187, %c0_188] : memref<8x32xf32, #tpu.memory_space<vmem>>, vector<8x32xf32>
    tpu.vector_store %arg12[%c0_187, %c0_188], %291 {strides = array<i32>} : memref<8x32xf32, #tpu.memory_space<vmem>>, vector<8x32xf32>,
    %294 = arith.truncf %291 : vector<8x32xf32> to vector<8x32xbf16>
    %c0_189 = arith.constant 0 : index
    %c0_190 = arith.constant 0 : index
    %295 = vector.load %arg14[%c0_189, %c0_190] : memref<8x32xbf16, #tpu.memory_space<vmem>>, vector<8x32xbf16>
    tpu.vector_store %arg14[%c0_189, %c0_190], %294 {strides = array<i32>} : memref<8x32xbf16, #tpu.memory_space<vmem>>, vector<8x32xbf16>,
    %296 = arith.index_cast %c6_i32 : i32 to index
    %c0_191 = arith.constant 0 : index
    %c0_192 = arith.constant 0 : index
    %297 = vector.load %arg8[%296, %c0_191, %c0_192] : memref<8x8x32xbf16, #tpu.memory_space<vmem>>, vector<1x8x32xbf16>
    %298 = vector.shape_cast %297 : vector<1x8x32xbf16> to vector<8x32xbf16>
    %299 = vector.shape_cast %294 : vector<8x32xbf16> to vector<1x8x32xbf16>
    tpu.vector_store %arg8[%296, %c0_191, %c0_192], %299 {strides = array<i32>} : memref<8x8x32xbf16, #tpu.memory_space<vmem>>, vector<1x8x32xbf16>,
    %c7_i32 = arith.constant 7 : i32
    %300 = arith.index_cast %c7_i32 : i32 to index
    %c0_193 = arith.constant 0 : index
    %c0_194 = arith.constant 0 : index
    %301 = vector.load %arg11[%300, %c0_193, %c0_194] : memref<8x8x128xf32, #tpu.memory_space<vmem>>, vector<1x8x128xf32>
    %302 = vector.shape_cast %301 : vector<1x8x128xf32> to vector<8x128xf32>
    %c0_195 = arith.constant 0 : index
    %c0_196 = arith.constant 0 : index
    %303 = vector.load %arg14[%c0_195, %c0_196] : memref<8x32xbf16, #tpu.memory_space<vmem>>, vector<8x32xbf16>
    %c0_197 = arith.constant 0 : index
    %c0_198 = arith.constant 0 : index
    %304 = vector.load %arg4[%c0_197, %c0_198] : memref<32x128xbf16, #tpu.memory_space<vmem>>, vector<32x128xbf16>
    %cst_199 = arith.constant dense<0.000000e+00> : vector<8x128xf32>
    %305 = tpu.matmul %303, %304, %cst_199 {dimension_numbers = #tpu.dot_dimension_numbers<[1], [0], [0], [1], [0, 0, 1, 1], [], []>} : vector<8x32xbf16>, vector<32x128xbf16>, vector<8x128xf32> -> vector<8x128xf32>
    %306 = arith.addf %302, %305 : vector<8x128xf32>
    %307 = vector.extract_strided_slice %306 {offsets = [0, 0], sizes = [8, 96], strides = [1, 1]} : vector<8x128xf32> to vector<8x96xf32>
    %308 = arith.negf %307 : vector<8x96xf32>
    %309 = math.exp %308 : vector<8x96xf32>
    %cst_200 = arith.constant 1.000000e+00 : f32
    %310 = vector.broadcast %cst_200 : f32 to vector<8x96xf32>
    %311 = arith.addf %310, %309 : vector<8x96xf32>
    %312 = arith.divf %310, %311 : vector<8x96xf32>
    %313 = vector.extract_strided_slice %306 {offsets = [0, 96], sizes = [8, 32], strides = [1, 1]} : vector<8x128xf32> to vector<8x32xf32>
    %314 = math.tanh %313 : vector<8x32xf32>
    %315 = vector.extract_strided_slice %312 {offsets = [0, 0], sizes = [8, 32], strides = [1, 1]} : vector<8x96xf32> to vector<8x32xf32>
    %316 = vector.extract_strided_slice %312 {offsets = [0, 32], sizes = [8, 32], strides = [1, 1]} : vector<8x96xf32> to vector<8x32xf32>
    %317 = vector.extract_strided_slice %312 {offsets = [0, 64], sizes = [8, 32], strides = [1, 1]} : vector<8x96xf32> to vector<8x32xf32>
    %c0_201 = arith.constant 0 : index
    %c0_202 = arith.constant 0 : index
    %318 = vector.load %arg13[%c0_201, %c0_202] : memref<8x32xf32, #tpu.memory_space<vmem>>, vector<8x32xf32>
    %319 = arith.mulf %316, %318 : vector<8x32xf32>
    %320 = arith.mulf %315, %314 : vector<8x32xf32>
    %321 = arith.addf %319, %320 : vector<8x32xf32>
    %322 = math.tanh %321 : vector<8x32xf32>
    %323 = arith.mulf %317, %322 : vector<8x32xf32>
    %c0_203 = arith.constant 0 : index
    %c0_204 = arith.constant 0 : index
    %324 = vector.load %arg13[%c0_203, %c0_204] : memref<8x32xf32, #tpu.memory_space<vmem>>, vector<8x32xf32>
    tpu.vector_store %arg13[%c0_203, %c0_204], %321 {strides = array<i32>} : memref<8x32xf32, #tpu.memory_space<vmem>>, vector<8x32xf32>,
    %c0_205 = arith.constant 0 : index
    %c0_206 = arith.constant 0 : index
    %325 = vector.load %arg12[%c0_205, %c0_206] : memref<8x32xf32, #tpu.memory_space<vmem>>, vector<8x32xf32>
    tpu.vector_store %arg12[%c0_205, %c0_206], %323 {strides = array<i32>} : memref<8x32xf32, #tpu.memory_space<vmem>>, vector<8x32xf32>,
    %326 = arith.truncf %323 : vector<8x32xf32> to vector<8x32xbf16>
    %c0_207 = arith.constant 0 : index
    %c0_208 = arith.constant 0 : index
    %327 = vector.load %arg14[%c0_207, %c0_208] : memref<8x32xbf16, #tpu.memory_space<vmem>>, vector<8x32xbf16>
    tpu.vector_store %arg14[%c0_207, %c0_208], %326 {strides = array<i32>} : memref<8x32xbf16, #tpu.memory_space<vmem>>, vector<8x32xbf16>,
    %328 = arith.index_cast %c7_i32 : i32 to index
    %c0_209 = arith.constant 0 : index
    %c0_210 = arith.constant 0 : index
    %329 = vector.load %arg8[%328, %c0_209, %c0_210] : memref<8x8x32xbf16, #tpu.memory_space<vmem>>, vector<1x8x32xbf16>
    %330 = vector.shape_cast %329 : vector<1x8x32xbf16> to vector<8x32xbf16>
    %331 = vector.shape_cast %326 : vector<8x32xbf16> to vector<1x8x32xbf16>
    tpu.vector_store %arg8[%328, %c0_209, %c0_210], %331 {strides = array<i32>} : memref<8x8x32xbf16, #tpu.memory_space<vmem>>, vector<1x8x32xbf16>,
    %c8_i32 = arith.constant 8 : i32
    %c0_i32_211 = arith.constant 0 : i32
    %332 = arith.cmpi eq, %arg1, %c0_i32_211 : i32
    %333 = arith.extui %332 : i1 to i32
    %c0_i32_212 = arith.constant 0 : i32
    %334 = arith.cmpi ne, %333, %c0_i32_212 : i32
    scf.if %334 {
      %c0_213 = arith.constant 0 : index
      %c0_214 = arith.constant 0 : index
      %335 = vector.load %arg12[%c0_213, %c0_214] : memref<8x32xf32, #tpu.memory_space<vmem>>, vector<8x32xf32>
      %c0_215 = arith.constant 0 : index
      %c0_216 = arith.constant 0 : index
      %336 = vector.load %arg9[%c0_215, %c0_216] : memref<8x32xf32, #tpu.memory_space<vmem>>, vector<8x32xf32>
      tpu.vector_store %arg9[%c0_215, %c0_216], %335 {strides = array<i32>} : memref<8x32xf32, #tpu.memory_space<vmem>>, vector<8x32xf32>,
      %c0_217 = arith.constant 0 : index
      %c0_218 = arith.constant 0 : index
      %337 = vector.load %arg13[%c0_217, %c0_218] : memref<8x32xf32, #tpu.memory_space<vmem>>, vector<8x32xf32>
      %c0_219 = arith.constant 0 : index
      %c0_220 = arith.constant 0 : index
      %338 = vector.load %arg10[%c0_219, %c0_220] : memref<8x32xf32, #tpu.memory_space<vmem>>, vector<8x32xf32>
      tpu.vector_store %arg10[%c0_219, %c0_220], %337 {strides = array<i32>} : memref<8x32xf32, #tpu.memory_space<vmem>>, vector<8x32xf32>,
    } else {
    }
    return
  }
  func.func @transform_0(%arg0: i32, %arg1: i32) -> (i32, i32, i32) {
    %c0_i32 = arith.constant 0 : i32
    %c0_i32_0 = arith.constant 0 : i32
    return %arg1, %arg0, %c0_i32 : i32, i32, i32
  }
  func.func @transform_1(%arg0: i32, %arg1: i32) -> (i32, i32) {
    %c0_i32 = arith.constant 0 : i32
    %c0_i32_0 = arith.constant 0 : i32
    %c0_i32_1 = arith.constant 0 : i32
    return %c0_i32, %c0_i32_0 : i32, i32
  }
  func.func @transform_2(%arg0: i32, %arg1: i32) -> (i32, i32) {
    %c0_i32 = arith.constant 0 : i32
    %c0_i32_0 = arith.constant 0 : i32
    %c0_i32_1 = arith.constant 0 : i32
    return %c0_i32, %c0_i32_0 : i32, i32
  }
  func.func @transform_3(%arg0: i32, %arg1: i32) -> (i32, i32) {
    %c0_i32 = arith.constant 0 : i32
    %c0_i32_0 = arith.constant 0 : i32
    %c0_i32_1 = arith.constant 0 : i32
    return %c0_i32, %c0_i32_0 : i32, i32
  }
  func.func @transform_4(%arg0: i32, %arg1: i32) -> (i32, i32) {
    %c0_i32 = arith.constant 0 : i32
    %c0_i32_0 = arith.constant 0 : i32
    return %arg0, %c0_i32 : i32, i32
  }
  func.func @transform_5(%arg0: i32, %arg1: i32) -> (i32, i32) {
    %c0_i32 = arith.constant 0 : i32
    %c0_i32_0 = arith.constant 0 : i32
    return %arg0, %c0_i32 : i32, i32
  }
  func.func @transform_6(%arg0: i32, %arg1: i32) -> (i32, i32, i32) {
    %c0_i32 = arith.constant 0 : i32
    %c0_i32_0 = arith.constant 0 : i32
    return %arg1, %arg0, %c0_i32 : i32, i32, i32
  }
  func.func @transform_7(%arg0: i32, %arg1: i32) -> (i32, i32) {
    %c0_i32 = arith.constant 0 : i32
    %c0_i32_0 = arith.constant 0 : i32
    return %arg0, %c0_i32 : i32, i32
  }
  func.func @transform_8(%arg0: i32, %arg1: i32) -> (i32, i32) {
    %c0_i32 = arith.constant 0 : i32
    %c0_i32_0 = arith.constant 0 : i32
    return %arg0, %c0_i32 : i32, i32
  }
}

</mosaic_0001>

<bundles_post_ra>
// kernel: char_rnn_forward.5
= control target key start
LH: loop header
LB: loop body
LE: loop exit
PB: predicated region body
PF: predicated region fallthrough
CT: control target
= control target key end

     0   :  { %s489_s12 = smov 0   ;;  %s491_s13 = smov 0   ;;  %s528_s0 = inlined_call_operand.vmem [shape: bf16[8,8,32], index: 0, kind: input, shape index: {}]   ;;  %s529_s1 = inlined_call_operand.vmem [shape: bf16[32,128], index: 1, kind: input, shape index: {}]   ;;  %s530_s2 = inlined_call_operand.vmem [shape: f32[1,128], index: 2, kind: input, shape index: {}]   ;;  %s531_s3 = inlined_call_operand.vmem [shape: f32[8,8,128], index: 3, kind: output, shape index: {}]  }
   0x1   :  { %s493_s14 = smov 0  }
   0x2 LB: > { %s32_s15 = sadd.s32 1, %s463_s13  ;;  %p404_p0 = scmp.ge.s32.totalorder %s467_s14, 1  ;;  %s467_s14 = sphi %s493_s14, %s13_s14   ;;  %s463_s13 = sphi %s491_s13, %s533_s13   ;;  %s459_s12 = sphi %s489_s12, %s532_s12  }
   0x3   : > { %p34_p1 = scmp.ge.s32.totalorder %s32_s15, 8  ;;  %p181_p2 = scmp.lt.s32.totalorder %s467_s14, 9 }
   0x5   : > { %s535_s15 = smov (%p34_p1, %s32_s15), 0  ;;  %p182_p3 = pnand %p404_p0, %p181_p2 }
   0x6   : > { %p219_p4 = scmp.lt.s32.totalorder (!%p182_p3), %s459_s12, 7 }
   0x7   : > { %185 = sbr.rel (%p182_p3) target bundleno = 154 (0x9a), region = 32 }
   0xc   : > { %v419_v0 = vld [vmem:[%s529_s1 + $0x8] sm:$0xff]  ;;  %v418_v1 = vld [vmem:[%s529_s1] sm:$0xff]  ;;  %s537_s12 = smov (!%p219_p4, %s459_s12), 7  ;;  %vm265_vm0 = vcmask 261120  }
   0xd   : > { %275 = vmatpush.bf16.msra.mxu0 %v419_v0  ;;  %s405_s20 = sshll.u32 %s537_s12, 2  ;;  %s406_s24 = sshll.u32 %s537_s12, 3  ;;  %v444_v3 = vld [vmem:[%s530_s2] ss:$0 sm:$0xff] }
   0xe   : > { %s225_s23 = scalar_lea.vmem %s528_s0, %s405_s20  ;;  %s242_s29 = scalar_lea.vmem %s531_s3, %s406_s24 }
   0xf   : > { %v244_v2 = vld [vmem:[%s225_s23] sm:$0xf] }
  0x11   : > { %276 = vmatpush.bf16.msra.mxu0 %v418_v1 }
  0x14   : > { %415 = vmatmul.msk.bf16.vlgmr.msra.gmra.mxu0 %vm265_vm0, %v244_v2 }
  0x91   : > { %v278_v4 = vpop.f32.mrf.mxu0 }
  0x92   : > { %v279_v5 = vadd.f32 %v444_v3, %v278_v4 }
  0x94   : > { %282 = vst [vmem:[%s242_s29] sm:$0xff] %v279_v5 }
  0x99   : > { %v280_v6 = vpop.f32.mrf.mxu0 }
  0x9a PF: > { %s13_s14 = sadd.s32 1, %s467_s14   ;;  %s532_s12 = smov %s463_s13 }
  0x9b   : > { %p10_p5 = scmp.ge.s32.totalorder %s13_s14, 10   ;;  %s533_s13 = smov %s535_s15 }
  0x9d   :  { %12 = sbr.rel (!%p10_p5) target bundleno = 2 (0x2), region = 68 }

// kernel: char_rnn_forward.3
= control target key start
LH: loop header
LB: loop body
LE: loop exit
PB: predicated region body
PF: predicated region fallthrough
CT: control target
= control target key end

     0   :  { %vm32_vm0 = vcmask 261120   ;;  %vm38_vm1 = vcmask 257024   ;;  %s1376_s26 = smov 32   ;;  %s1378_s17 = smov 96   ;;  %s1744_s1 = inlined_call_operand.vmem [shape: bf16[32,128], index: 1, kind: input, shape index: {}]   ;;  %s1745_s4 = inlined_call_operand.vmem [shape: f32[8,32], index: 4, kind: input, shape index: {}]   ;;  %s1746_s3 = inlined_call_operand.vmem [shape: f32[1,128], index: 3, kind: input, shape index: {}]   ;;  %s1747_s0 = inlined_call_operand.vmem [shape: bf16[8,8,32], index: 0, kind: input, shape index: {}]   ;;  %s1748_s2 = inlined_call_operand.vmem [shape: bf16[32,128], index: 2, kind: input, shape index: {}]   ;;  %s1749_s5 = inlined_call_operand.vmem [shape: f32[8,32], index: 5, kind: input, shape index: {}]   ;;  %s1750_s6 = inlined_call_operand.vmem [shape: bf16[8,8,32], index: 6, kind: output, shape index: {0}]   ;;  %s1751_s8 = inlined_call_operand.vmem [shape: f32[8,32], index: 8, kind: output, shape index: {2}]   ;;  %s1752_s7 = inlined_call_operand.vmem [shape: f32[8,32], index: 7, kind: output, shape index: {1}]  }
   0x1   :  { %v1277_v0 = vld [vmem:[%s1744_s1 + $0x8] sm:$0xff]  ;;  %v1276_v1 = vld [vmem:[%s1744_s1] sm:$0xff]  ;;  %v1149_v9 = vld [vmem:[%s1747_s0 + $0x10] sm:$0xf] }
   0x2   :  { %71 = vmatpush.bf16.msra.mxu0 %v1277_v0  ;;  %v36_v2 = vld [vmem:[%s1745_s4] sm:$0xff]  ;;  %v1285_v3 = vld [vmem:[%s1744_s1 + $0x8] sm:$0xff]  ;;  %v1159_v52 = vld [vmem:[%s1747_s0 + $0x14] sm:$0xf]  ;;  %s1377_s4 = smov 64  }
   0x3   :  { %v37_v4 = vpack.c.bf16 %v36_v2, %v36_v2  ;;  %33 = vst.msk [vmem:[#allocation3] sm:$0xff] %vm32_vm0, %v36_v2  ;;  %v41_v5 = vld [vmem:[%s1747_s0] sm:$0xf]  ;;  %v1293_v7 = vld [vmem:[%s1748_s2 + $0x8] sm:$0xff]  ;;  %v1119_v46 = vld [vmem:[%s1747_s0 + $0x4] sm:$0xf] }
   0x4   :  { %v1284_v6 = vld [vmem:[%s1744_s1] sm:$0xff]  ;;  %v1279_v43 = vld [vmem:[%s1744_s1 + $0x8] sm:$0xff] }
   0x5   :  { %39 = vst.msk [vmem:[#allocation5] sm:$0xf] %vm38_vm1, %v37_v4  ;;  %v1292_v8 = vld [vmem:[%s1748_s2] sm:$0xff]  ;;  %106 = vmatpush.bf16.msra.mxu1 %v1279_v43  ;;  %v1287_v45 = vld [vmem:[%s1744_s1 + $0x8] sm:$0xff] }
   0x6   :  { %72 = vmatpush.bf16.msra.mxu0 %v1276_v1  ;;  %v34_v13 = vld [vmem:[%s1749_s5] sm:$0xff]  ;;  %v1295_v48 = vld [vmem:[%s1748_s2 + $0x8] sm:$0xff] }
   0x7   :  { %35 = vst.msk [vmem:[#allocation4] sm:$0xff] %vm32_vm0, %v34_v13  ;;  %v1465_v16 = vld [vmem:[%s1746_s3] ss:$0 sm:$0xff] }
   0x8   :  { %v1278_v44 = vld [vmem:[%s1744_s1] sm:$0xff] }
   0x9   :  { %1118 = vmatmul.msk.bf16.vlgmr.msra.gmra.mxu0 %vm32_vm0, %v41_v5  ;;  %107 = vmatpush.bf16.msra.mxu1 %v1278_v44  ;;  %v1286_v47 = vld [vmem:[%s1744_s1] sm:$0xff] }
   0xa   :  { %214 = vmatpush.bf16.msrb.mxu0 %v1285_v3  ;;  %v1294_v53 = vld [vmem:[%s1748_s2] sm:$0xff] }
   0xc   :  { %v332_v10 = vld [vmem:[#allocation5] sm:$0xf]  ;;  %1128 = vmatmul.msk.bf16.vlgmr.msra.gmra.mxu1 %vm32_vm0, %v1119_v46 }
   0xd   :  { %250 = vmatpush.bf16.msrb.mxu1 %v1287_v45 }
   0xe   :  { %215 = vmatpush.bf16.msrb.mxu0 %v1284_v6  ;;  %v386_v22 = vld [vmem:[#allocation4] sm:$0xff] }
  0x11   :  { %251 = vmatpush.bf16.msrb.mxu1 %v1286_v47 }
  0x12   :  { %358 = vmatpush.bf16.msra.mxu0 %v1293_v7 }
  0x15   :  { %453 = vmatpush.bf16.msra.mxu1 %v1295_v48 }
  0x16   :  { %359 = vmatpush.bf16.msra.mxu0 %v1292_v8 }
  0x19   :  { %1158 = vmatmul.msk.bf16.vlgmr.msrb.gmra.mxu0 %vm32_vm0, %v1149_v9  ;;  %454 = vmatpush.bf16.msra.mxu1 %v1294_v53 }
  0x1c   :  { %1168 = vmatmul.msk.bf16.vlgmr.msrb.gmra.mxu1 %vm32_vm0, %v1159_v52 }
  0x29   :  { %1197 = vmatmul.msk.bf16.vlgmr.msra.gmra.mxu0 %vm32_vm0, %v332_v10 }
  0x86   :  { %v74_v11 = vpop.f32.mrf.mxu0 }
  0x87   :  { %v75_v17 = vadd.f32 %v1465_v16, %v74_v11 }
  0x89   :  { %v109_v58 = vpop.f32.mrf.mxu1 }
  0x8a   :  { %v110_v62 = vadd.f32 %v1465_v16, %v109_v58 }
  0x8e   :  { %v76_v12 = vpop.f32.mrf.mxu0 }
  0x91   :  { %v111_v59 = vpop.f32.mrf.mxu1 }
  0x96   :  { %v1460_v14 = vpop.f32.mrf.mxu0 }
  0x99   :  { %v1512_v60 = vpop.f32.mrf.mxu1 }
  0x9e   :  { %v219_v15 = vpop.f32.mrf.mxu0 }
  0xa1   :  { %v255_v61 = vpop.f32.mrf.mxu1 }
  0xa6   :  { %v361_v18 = vpop.f32.mrf.mxu0 }
  0xa7   :  { %v365_v19 = vadd.f32 %v361_v18, %v75_v17 }
  0xa9   :  { %1312 = vtanh.f32 %v365_v19  ;;  %v1198_v23 = vmul.f32 -1.442695, %v365_v19 }
  0xab   :  { %1314 = vpow2.f32 %v1198_v23 }
  0xae   :  { %v363_v20 = vpop.f32.mrf.mxu0 }
  0xaf   :  { %v1313_v21 = vpop.eup %1312 }
  0xb0   :  { %393 = vrot.lane.b32.xlu0 %v1313_v21, %s1376_s26 }
  0xb1   :  { %v1315_v24 = vpop.eup %1314 }
  0xb2   :  { %v369_v25 = vadd.f32 1.0, %v1315_v24 }
  0xb4   :  { %1316 = vrcp.f32 %v369_v25  ;;  %v381_v31 = vand.u32 2147483648, %v369_v25  ;;  %vm375_vm3 = vweird.f32 %v369_v25  ;;  %v379_v32 = vand.u32 2147483647, %v369_v25 }
  0xb6   :  { %v382_v34 = vor.u32 1.1754944e-38, %v381_v31  ;;  %vm380_vm5 = vcmp.eq.f32.partialorder %v379_v32, 8.507059e+37  ;;  %v1297_v31 = vld [vmem:[%s1748_s2 + $0x8] sm:$0xff] }
  0xb8   :  { %388 = vrot.lane.b32.xlu0 %v386_v22, %s1376_s26 }
  0xba   :  { %v1317_v26 = vpop.eup %1316 }
  0xbb   :  { %v371_v27 = vmul.f32 %v1317_v26, %v369_v25  ;;  %vm376_vm2 = vweird.f32 %v1317_v26 }
  0xbc   :  { %vm377_vm4 = vmor %vm375_vm3, %vm376_vm2 }
  0xbd   :  { %v372_v28 = vsub.f32 1.0, %v371_v27  ;;  %v1280_v27 = vld [vmem:[%s1744_s1] sm:$0xff] }
  0xbf   :  { %v373_v29 = vmul.f32 %v1317_v26, %v372_v28  ;;  %v1289_v28 = vld [vmem:[%s1744_s1 + $0x8] sm:$0xff] }
  0xc1   :  { %v374_v30 = vadd.f32 %v1317_v26, %v373_v29  ;;  %v1129_v29 = vld [vmem:[%s1747_s0 + $0x8] sm:$0xf] }
  0xc3   :  { %v378_v33 = vsel %vm377_vm4, %v1317_v26, %v374_v30  ;;  %v1281_v26 = vld [vmem:[%s1744_s1 + $0x8] sm:$0xff]  ;;  %v1288_v30 = vld [vmem:[%s1744_s1] sm:$0xff] }
  0xc4   :  { %v383_v36 = vsel %vm380_vm5, %v382_v34, %v378_v33  ;;  %142 = vmatpush.bf16.msra.mxu2 %v1281_v26 }
  0xc8   :  { %143 = vmatpush.bf16.msra.mxu2 %v1280_v27 }
  0xcb   :  { %1138 = vmatmul.msk.bf16.vlgmr.msra.gmra.mxu2 %vm32_vm0, %v1129_v29 }
  0xcc   :  { %286 = vmatpush.bf16.msrb.mxu2 %v1289_v28 }
  0xd0   :  { %287 = vmatpush.bf16.msrb.mxu2 %v1288_v30 }
  0xd4   :  { %548 = vmatpush.bf16.msra.mxu2 %v1297_v31 }
 0x122   :  { %v394_v35 = vpop.permute.xlu0 %393 }
 0x123   :  { %v396_v37 = vmul.f32 %v394_v35, %v383_v36  ;;  %v1169_v35 = vld [vmem:[%s1747_s0 + $0x18] sm:$0xf] }
 0x124   :  { %1178 = vmatmul.msk.bf16.vlgmr.msrb.gmra.mxu2 %vm32_vm0, %v1169_v35 }
 0x125   :  { %398 = vrot.lane.b32.xlu1 %v396_v37, %s1376_s26  ;;  %v1296_v37 = vld [vmem:[%s1748_s2] sm:$0xff] }
 0x126   :  { %549 = vmatpush.bf16.msra.mxu2 %v1296_v37 }
 0x12a   :  { %v389_v38 = vpop.permute.xlu0 %388 }
 0x12b   :  { %v391_v39 = vmul.f32 %v389_v38, %v383_v36 }
 0x197   :  { %v399_v40 = vpop.permute.xlu1 %398 }
 0x198   :  { %v401_v41 = vadd.f32 %v399_v40, %v391_v39  ;;  %v145_v39 = vpop.f32.mrf.mxu2 }
 0x199   :  { %v146_v44 = vadd.f32 %v1465_v16, %v145_v39 }
 0x19a   :  { %1318 = vtanh.f32 %v401_v41 }
 0x1a0   :  { %v1319_v42 = vpop.eup %1318 }
 0x1a1   :  { %404 = vrot.lane.b32.xlu1 %v1319_v42, %s1376_s26 }
 0x213   :  { %v405_v49 = vpop.permute.xlu1 %404 }
 0x214   :  { %v1491_v50 = vmul.f32 %v405_v49, %v383_v36 }
 0x216   :  { %v418_v51 = vpack.c.bf16 %v1491_v50, %v1491_v50 }
 0x218   :  { %420 = vrot.lane.b32.xlu2 %v418_v51, %s1377_s4 }
 0x220   :  { %409 = vrot.lane.b32.xlu2 %v401_v41, %s1378_s17  ;;  %v147_v41 = vpop.f32.mrf.mxu2 }
 0x228   :  { %v1558_v42 = vpop.f32.mrf.mxu2 }
 0x230   :  { %v291_v43 = vpop.f32.mrf.mxu2 }
 0x272   :  { %v421_v54 = vpop.permute.xlu2 %420 }
 0x273   :  { %424 = vst.msk [vmem:[#allocation5] sm:$0xf] %vm38_vm1, %v421_v54 }
 0x274   :  { %425 = vst.msk [vmem:[%s1750_s6] sm:$0xf] %vm38_vm1, %v421_v54 }
 0x27a   :  { %v410_v55 = vpop.permute.xlu2 %409  ;;  %v427_v56 = vld [vmem:[#allocation5] sm:$0xf] }
 0x27b   :  { %412 = vst.msk [vmem:[#allocation4] sm:$0xff] %vm32_vm0, %v410_v55  ;;  %1207 = vmatmul.msk.bf16.vlgmr.msra.gmra.mxu1 %vm32_vm0, %v427_v56 }
 0x282   :  { %v481_v57 = vld [vmem:[#allocation4] sm:$0xff] }
 0x283   :  { %483 = vrot.lane.b32.xlu1 %v481_v57, %s1376_s26 }
 0x2f5   :  { %v484_v20 = vpop.permute.xlu1 %483 }
 0x2f8   :  { %v456_v63 = vpop.f32.mrf.mxu1 }
 0x2f9   :  { %v460_v0 = vadd.f32 %v456_v63, %v110_v62 }
 0x2fb   :  { %1320 = vtanh.f32 %v460_v0  ;;  %v1208_v3 = vmul.f32 -1.442695, %v460_v0 }
 0x2fd   :  { %1322 = vpow2.f32 %v1208_v3 }
 0x300   :  { %v458_v1 = vpop.f32.mrf.mxu1 }
 0x301   :  { %v1321_v2 = vpop.eup %1320 }
 0x302   :  { %488 = vrot.lane.b32.xlu0 %v1321_v2, %s1376_s26 }
 0x303   :  { %v1323_v4 = vpop.eup %1322 }
 0x304   :  { %v464_v5 = vadd.f32 1.0, %v1323_v4 }
 0x306   :  { %1324 = vrcp.f32 %v464_v5  ;;  %v476_v11 = vand.u32 2147483648, %v464_v5  ;;  %vm470_vm7 = vweird.f32 %v464_v5  ;;  %v474_v12 = vand.u32 2147483647, %v464_v5 }
 0x308   :  { %v477_v15 = vor.u32 1.1754944e-38, %v476_v11  ;;  %vm475_vm9 = vcmp.eq.f32.partialorder %v474_v12, 8.507059e+37  ;;  %v1139_v11 = vld [vmem:[%s1747_s0 + $0xc] sm:$0xf]  ;;  %v1290_v12 = vld [vmem:[%s1744_s1] sm:$0xff] }
 0x30c   :  { %v1325_v6 = vpop.eup %1324 }
 0x30d   :  { %v466_v7 = vmul.f32 %v1325_v6, %v464_v5  ;;  %vm471_vm6 = vweird.f32 %v1325_v6 }
 0x30e   :  { %vm472_vm8 = vmor %vm470_vm7, %vm471_vm6 }
 0x30f   :  { %v467_v8 = vsub.f32 1.0, %v466_v7 }
 0x311   :  { %v468_v9 = vmul.f32 %v1325_v6, %v467_v8  ;;  %v1283_v8 = vld [vmem:[%s1744_s1 + $0x8] sm:$0xff] }
 0x312   :  { %178 = vmatpush.bf16.msra.mxu3 %v1283_v8 }
 0x313   :  { %v469_v10 = vadd.f32 %v1325_v6, %v468_v9  ;;  %v1282_v9 = vld [vmem:[%s1744_s1] sm:$0xff] }
 0x315   :  { %v473_v13 = vsel %vm472_vm8, %v1325_v6, %v469_v10  ;;  %v1291_v10 = vld [vmem:[%s1744_s1 + $0x8] sm:$0xff] }
 0x316   :  { %v478_v18 = vsel %vm475_vm9, %v477_v15, %v473_v13  ;;  %179 = vmatpush.bf16.msra.mxu3 %v1282_v9  ;;  %v1299_v13 = vld [vmem:[%s1748_s2 + $0x8] sm:$0xff] }
 0x317   :  { %v486_v21 = vmul.f32 %v484_v20, %v478_v18 }
 0x319   :  { %1148 = vmatmul.msk.bf16.vlgmr.msra.gmra.mxu3 %vm32_vm0, %v1139_v11 }
 0x31a   :  { %322 = vmatpush.bf16.msrb.mxu3 %v1291_v10 }
 0x31e   :  { %323 = vmatpush.bf16.msrb.mxu3 %v1290_v12 }
 0x322   :  { %643 = vmatpush.bf16.msra.mxu3 %v1299_v13 }
 0x374   :  { %v489_v17 = vpop.permute.xlu0 %488 }
 0x375   :  { %v491_v19 = vmul.f32 %v489_v17, %v478_v18 }
 0x377   :  { %493 = vrot.lane.b32.xlu2 %v491_v19, %s1376_s26  ;;  %v1179_v19 = vld [vmem:[%s1747_s0 + $0x1c] sm:$0xf] }
 0x378   :  { %1188 = vmatmul.msk.bf16.vlgmr.msrb.gmra.mxu3 %vm32_vm0, %v1179_v19 }
 0x3d1   :  { %v494_v22 = vpop.permute.xlu2 %493 }
 0x3d2   :  { %v496_v23 = vadd.f32 %v494_v22, %v486_v21  ;;  %v1298_v21 = vld [vmem:[%s1748_s2] sm:$0xff] }
 0x3d3   :  { %644 = vmatpush.bf16.msra.mxu3 %v1298_v21 }
 0x3d4   :  { %1326 = vtanh.f32 %v496_v23  ;;  %504 = vrot.lane.b32.xlu2 %v496_v23, %s1378_s17  ;;  %v181_v23 = vpop.f32.mrf.mxu3 }
 0x3d5   :  { %v182_v28 = vadd.f32 %v1465_v16, %v181_v23 }
 0x3da   :  { %v1327_v24 = vpop.eup %1326 }
 0x3db   :  { %499 = vrot.lane.b32.xlu0 %v1327_v24, %s1376_s26 }
 0x42e   :  { %v505_v25 = vpop.permute.xlu2 %504 }
 0x42f   :  { %507 = vst.msk [vmem:[#allocation4] sm:$0xff] %vm32_vm0, %v505_v25  ;;  %v183_v25 = vpop.f32.mrf.mxu3 }
 0x436   :  { %v576_v36 = vld [vmem:[#allocation4] sm:$0xff] }
 0x437   :  { %v1604_v26 = vpop.f32.mrf.mxu3 }
 0x43f   :  { %v327_v27 = vpop.f32.mrf.mxu3 }
 0x44d   :  { %v500_v32 = vpop.permute.xlu0 %499 }
 0x44e   :  { %v1539_v33 = vmul.f32 %v500_v32, %v478_v18 }
 0x450   :  { %v513_v34 = vpack.c.bf16 %v1539_v33, %v1539_v33 }
 0x452   :  { %515 = vrot.lane.b32.xlu1 %v513_v34, %s1377_s4 }
 0x45a   :  { %578 = vrot.lane.b32.xlu1 %v576_v36, %s1376_s26 }
 0x4c4   :  { %v516_v38 = vpop.permute.xlu1 %515 }
 0x4c5   :  { %518 = vst.msk [vmem:[#allocation5] sm:$0xf] %vm38_vm1, %v516_v38 }
 0x4c6   :  { %1209 = vst.msk [vmem:[%s1750_s6 + $0x4] sm:$0xf] %vm38_vm1, %v516_v38 }
 0x4cc   :  { %v522_v40 = vld [vmem:[#allocation5] sm:$0xf]  ;;  %v579_v2 = vpop.permute.xlu1 %578 }
 0x4cd   :  { %1218 = vmatmul.msk.bf16.vlgmr.msra.gmra.mxu2 %vm32_vm0, %v522_v40 }
 0x550   :  { %v551_v45 = vpop.f32.mrf.mxu2 }
 0x551   :  { %v555_v46 = vadd.f32 %v551_v45, %v146_v44 }
 0x553   :  { %1328 = vtanh.f32 %v555_v46  ;;  %v1219_v49 = vmul.f32 -1.442695, %v555_v46 }
 0x555   :  { %1330 = vpow2.f32 %v1219_v49 }
 0x558   :  { %v553_v47 = vpop.f32.mrf.mxu2 }
 0x559   :  { %v1329_v48 = vpop.eup %1328 }
 0x55a   :  { %583 = vrot.lane.b32.xlu0 %v1329_v48, %s1376_s26 }
 0x55b   :  { %v1331_v51 = vpop.eup %1330 }
 0x55c   :  { %v559_v52 = vadd.f32 1.0, %v1331_v51 }
 0x55e   :  { %1332 = vrcp.f32 %v559_v52  ;;  %v571_v58 = vand.u32 2147483648, %v559_v52  ;;  %vm565_vm11 = vweird.f32 %v559_v52  ;;  %v569_v59 = vand.u32 2147483647, %v559_v52 }
 0x560   :  { %v572_v62 = vor.u32 1.1754944e-38, %v571_v58  ;;  %vm570_vm13 = vcmp.eq.f32.partialorder %v569_v59, 8.507059e+37 }
 0x564   :  { %v1333_v53 = vpop.eup %1332 }
 0x565   :  { %v561_v54 = vmul.f32 %v1333_v53, %v559_v52  ;;  %vm566_vm10 = vweird.f32 %v1333_v53 }
 0x566   :  { %vm567_vm12 = vmor %vm565_vm11, %vm566_vm10 }
 0x567   :  { %v562_v55 = vsub.f32 1.0, %v561_v54 }
 0x569   :  { %v563_v56 = vmul.f32 %v1333_v53, %v562_v55 }
 0x56b   :  { %v564_v57 = vadd.f32 %v1333_v53, %v563_v56 }
 0x56d   :  { %v568_v61 = vsel %vm567_vm12, %v1333_v53, %v564_v57  ;;  %v1301_v57 = vld [vmem:[%s1748_s2 + $0x8] sm:$0xff] }
 0x56e   :  { %v573_v0 = vsel %vm570_vm13, %v572_v62, %v568_v61  ;;  %738 = vmatpush.bf16.msrb.mxu0 %v1301_v57 }
 0x56f   :  { %v581_v3 = vmul.f32 %v579_v2, %v573_v0  ;;  %v218_v2 = vadd.f32 %v1465_v16, %v1460_v14 }
 0x5cc   :  { %v584_v63 = vpop.permute.xlu0 %583 }
 0x5cd   :  { %v586_v1 = vmul.f32 %v584_v63, %v573_v0  ;;  %v1300_v63 = vld [vmem:[%s1748_s2] sm:$0xff] }
 0x5ce   :  { %739 = vmatpush.bf16.msrb.mxu0 %v1300_v63 }
 0x5cf   :  { %588 = vrot.lane.b32.xlu2 %v586_v1, %s1376_s26 }
 0x629   :  { %v589_v4 = vpop.permute.xlu2 %588 }
 0x62a   :  { %v591_v5 = vadd.f32 %v589_v4, %v581_v3 }
 0x62c   :  { %1334 = vtanh.f32 %v591_v5  ;;  %599 = vrot.lane.b32.xlu2 %v591_v5, %s1378_s17 }
 0x632   :  { %v1335_v6 = vpop.eup %1334 }
 0x633   :  { %594 = vrot.lane.b32.xlu0 %v1335_v6, %s1376_s26 }
 0x686   :  { %v600_v7 = vpop.permute.xlu2 %599 }
 0x687   :  { %602 = vst.msk [vmem:[#allocation4] sm:$0xff] %vm32_vm0, %v600_v7 }
 0x68e   :  { %v671_v20 = vld [vmem:[#allocation4] sm:$0xff] }
 0x6a5   :  { %v595_v15 = vpop.permute.xlu0 %594 }
 0x6a6   :  { %v1585_v17 = vmul.f32 %v595_v15, %v573_v0 }
 0x6a8   :  { %v608_v18 = vpack.c.bf16 %v1585_v17, %v1585_v17 }
 0x6aa   :  { %610 = vrot.lane.b32.xlu1 %v608_v18, %s1377_s4 }
 0x6b2   :  { %673 = vrot.lane.b32.xlu1 %v671_v20, %s1376_s26 }
 0x71c   :  { %v611_v22 = vpop.permute.xlu1 %610 }
 0x71d   :  { %613 = vst.msk [vmem:[#allocation5] sm:$0xf] %vm38_vm1, %v611_v22 }
 0x71e   :  { %1220 = vst.msk [vmem:[%s1750_s6 + $0x8] sm:$0xf] %vm38_vm1, %v611_v22 }
 0x724   :  { %v617_v24 = vld [vmem:[#allocation5] sm:$0xf]  ;;  %v674_v51 = vpop.permute.xlu1 %673 }
 0x725   :  { %1229 = vmatmul.msk.bf16.vlgmr.msra.gmra.mxu3 %vm32_vm0, %v617_v24 }
 0x7a8   :  { %v646_v29 = vpop.f32.mrf.mxu3 }
 0x7a9   :  { %v650_v30 = vadd.f32 %v646_v29, %v182_v28 }
 0x7ab   :  { %1336 = vtanh.f32 %v650_v30  ;;  %v1230_v34 = vmul.f32 -1.442695, %v650_v30 }
 0x7ad   :  { %1338 = vpow2.f32 %v1230_v34 }
 0x7b0   :  { %v648_v31 = vpop.f32.mrf.mxu3 }
 0x7b1   :  { %v1337_v32 = vpop.eup %1336  ;;  %v1303_v31 = vld [vmem:[%s1748_s2 + $0x8] sm:$0xff] }
 0x7b2   :  { %678 = vrot.lane.b32.xlu0 %v1337_v32, %s1376_s26  ;;  %833 = vmatpush.bf16.msrb.mxu1 %v1303_v31 }
 0x7b3   :  { %v1339_v35 = vpop.eup %1338 }
 0x7b4   :  { %v654_v36 = vadd.f32 1.0, %v1339_v35 }
 0x7b6   :  { %1340 = vrcp.f32 %v654_v36  ;;  %v666_v43 = vand.u32 2147483648, %v654_v36  ;;  %vm660_vm15 = vweird.f32 %v654_v36  ;;  %v664_v44 = vand.u32 2147483647, %v654_v36 }
 0x7b8   :  { %v667_v46 = vor.u32 1.1754944e-38, %v666_v43  ;;  %vm665_vm3 = vcmp.eq.f32.partialorder %v664_v44, 8.507059e+37 }
 0x7bc   :  { %v1341_v37 = vpop.eup %1340 }
 0x7bd   :  { %v656_v38 = vmul.f32 %v1341_v37, %v654_v36  ;;  %vm661_vm14 = vweird.f32 %v1341_v37 }
 0x7be   :  { %vm662_vm2 = vmor %vm660_vm15, %vm661_vm14 }
 0x7bf   :  { %v657_v39 = vsub.f32 1.0, %v656_v38 }
 0x7c1   :  { %v658_v40 = vmul.f32 %v1341_v37, %v657_v39 }
 0x7c3   :  { %v659_v41 = vadd.f32 %v1341_v37, %v658_v40  ;;  %v254_v40 = vadd.f32 %v1465_v16, %v1512_v60 }
 0x7c5   :  { %v663_v45 = vsel %vm662_vm2, %v1341_v37, %v659_v41  ;;  %v1302_v37 = vld [vmem:[%s1748_s2] sm:$0xff] }
 0x7c6   :  { %v668_v48 = vsel %vm665_vm3, %v667_v46, %v663_v45  ;;  %834 = vmatpush.bf16.msrb.mxu1 %v1302_v37 }
 0x7c7   :  { %v676_v52 = vmul.f32 %v674_v51, %v668_v48 }
 0x824   :  { %v679_v47 = vpop.permute.xlu0 %678 }
 0x825   :  { %v681_v49 = vmul.f32 %v679_v47, %v668_v48 }
 0x827   :  { %683 = vrot.lane.b32.xlu2 %v681_v49, %s1376_s26 }
 0x881   :  { %v684_v53 = vpop.permute.xlu2 %683 }
 0x882   :  { %v686_v54 = vadd.f32 %v684_v53, %v676_v52 }
 0x884   :  { %1342 = vtanh.f32 %v686_v54  ;;  %694 = vrot.lane.b32.xlu2 %v686_v54, %s1378_s17 }
 0x88a   :  { %v1343_v55 = vpop.eup %1342 }
 0x88b   :  { %689 = vrot.lane.b32.xlu0 %v1343_v55, %s1376_s26 }
 0x8de   :  { %v695_v56 = vpop.permute.xlu2 %694 }
 0x8df   :  { %697 = vst.msk [vmem:[#allocation4] sm:$0xff] %vm32_vm0, %v695_v56 }
 0x8e6   :  { %v766_v62 = vld [vmem:[#allocation4] sm:$0xff] }
 0x8fd   :  { %v690_v58 = vpop.permute.xlu0 %689 }
 0x8fe   :  { %v1615_v59 = vmul.f32 %v690_v58, %v668_v48 }
 0x900   :  { %v703_v61 = vpack.c.bf16 %v1615_v59, %v1615_v59 }
 0x902   :  { %705 = vrot.lane.b32.xlu1 %v703_v61, %s1377_s4 }
 0x90a   :  { %768 = vrot.lane.b32.xlu1 %v766_v62, %s1376_s26 }
 0x974   :  { %v706_v0 = vpop.permute.xlu1 %705 }
 0x975   :  { %708 = vst.msk [vmem:[#allocation5] sm:$0xf] %vm38_vm1, %v706_v0 }
 0x976   :  { %1231 = vst.msk [vmem:[%s1750_s6 + $0xc] sm:$0xf] %vm38_vm1, %v706_v0 }
 0x97c   :  { %v712_v1 = vld [vmem:[#allocation5] sm:$0xf]  ;;  %v769_v24 = vpop.permute.xlu1 %768 }
 0x97d   :  { %1240 = vmatmul.msk.bf16.vlgmr.msrb.gmra.mxu0 %vm32_vm0, %v712_v1 }
 0x9fa   :  { %v741_v3 = vpop.f32.mrf.mxu0 }
 0x9fb   :  { %v745_v4 = vadd.f32 %v741_v3, %v218_v2 }
 0x9fd   :  { %1344 = vtanh.f32 %v745_v4  ;;  %v1241_v7 = vmul.f32 -1.442695, %v745_v4 }
 0x9ff   :  { %1346 = vpow2.f32 %v1241_v7 }
 0xa02   :  { %v743_v5 = vpop.f32.mrf.mxu0 }
 0xa03   :  { %v1345_v6 = vpop.eup %1344  ;;  %v1305_v5 = vld [vmem:[%s1748_s2 + $0x8] sm:$0xff] }
 0xa04   :  { %773 = vrot.lane.b32.xlu0 %v1345_v6, %s1376_s26  ;;  %928 = vmatpush.bf16.msrb.mxu2 %v1305_v5 }
 0xa05   :  { %v1347_v8 = vpop.eup %1346 }
 0xa06   :  { %v749_v9 = vadd.f32 1.0, %v1347_v8 }
 0xa08   :  { %1348 = vrcp.f32 %v749_v9  ;;  %v761_v18 = vand.u32 2147483648, %v749_v9  ;;  %vm755_vm5 = vweird.f32 %v749_v9  ;;  %v759_v14 = vand.u32 2147483647, %v749_v9 }
 0xa0a   :  { %v762_v20 = vor.u32 1.1754944e-38, %v761_v18  ;;  %vm760_vm7 = vcmp.eq.f32.partialorder %v759_v14, 8.507059e+37 }
 0xa0e   :  { %v1349_v10 = vpop.eup %1348 }
 0xa0f   :  { %v751_v11 = vmul.f32 %v1349_v10, %v749_v9  ;;  %vm756_vm4 = vweird.f32 %v1349_v10 }
 0xa10   :  { %vm757_vm6 = vmor %vm755_vm5, %vm756_vm4 }
 0xa11   :  { %v752_v12 = vsub.f32 1.0, %v751_v11 }
 0xa13   :  { %v753_v13 = vmul.f32 %v1349_v10, %v752_v12 }
 0xa15   :  { %v754_v15 = vadd.f32 %v1349_v10, %v753_v13  ;;  %v290_v13 = vadd.f32 %v1465_v16, %v1558_v42 }
 0xa17   :  { %v758_v19 = vsel %vm757_vm6, %v1349_v10, %v754_v15  ;;  %v1304_v10 = vld [vmem:[%s1748_s2] sm:$0xff] }
 0xa18   :  { %v763_v22 = vsel %vm760_vm7, %v762_v20, %v758_v19  ;;  %929 = vmatpush.bf16.msrb.mxu2 %v1304_v10 }
 0xa19   :  { %v771_v25 = vmul.f32 %v769_v24, %v763_v22 }
 0xa76   :  { %v774_v21 = vpop.permute.xlu0 %773 }
 0xa77   :  { %v776_v23 = vmul.f32 %v774_v21, %v763_v22 }
 0xa79   :  { %778 = vrot.lane.b32.xlu2 %v776_v23, %s1376_s26 }
 0xad3   :  { %v779_v27 = vpop.permute.xlu2 %778 }
 0xad4   :  { %v781_v28 = vadd.f32 %v779_v27, %v771_v25 }
 0xad6   :  { %1350 = vtanh.f32 %v781_v28  ;;  %789 = vrot.lane.b32.xlu2 %v781_v28, %s1378_s17 }
 0xadc   :  { %v1351_v29 = vpop.eup %1350 }
 0xadd   :  { %784 = vrot.lane.b32.xlu0 %v1351_v29, %s1376_s26 }
 0xb30   :  { %v790_v30 = vpop.permute.xlu2 %789 }
 0xb31   :  { %792 = vst.msk [vmem:[#allocation4] sm:$0xff] %vm32_vm0, %v790_v30 }
 0xb38   :  { %v861_v36 = vld [vmem:[#allocation4] sm:$0xff] }
 0xb4f   :  { %v785_v32 = vpop.permute.xlu0 %784 }
 0xb50   :  { %v1640_v34 = vmul.f32 %v785_v32, %v763_v22 }
 0xb52   :  { %v798_v35 = vpack.c.bf16 %v1640_v34, %v1640_v34 }
 0xb54   :  { %800 = vrot.lane.b32.xlu1 %v798_v35, %s1377_s4 }
 0xb5c   :  { %863 = vrot.lane.b32.xlu1 %v861_v36, %s1376_s26 }
 0xbc6   :  { %v801_v38 = vpop.permute.xlu1 %800 }
 0xbc7   :  { %803 = vst.msk [vmem:[#allocation5] sm:$0xf] %vm38_vm1, %v801_v38 }
 0xbc8   :  { %1242 = vst.msk [vmem:[%s1750_s6 + $0x10] sm:$0xf] %vm38_vm1, %v801_v38 }
 0xbce   :  { %v807_v39 = vld [vmem:[#allocation5] sm:$0xf]  ;;  %v864_v63 = vpop.permute.xlu1 %863 }
 0xbcf   :  { %1251 = vmatmul.msk.bf16.vlgmr.msrb.gmra.mxu1 %vm32_vm0, %v807_v39 }
 0xc4c   :  { %v836_v41 = vpop.f32.mrf.mxu1 }
 0xc4d   :  { %v840_v43 = vadd.f32 %v836_v41, %v254_v40 }
 0xc4f   :  { %1352 = vtanh.f32 %v840_v43  ;;  %v1252_v46 = vmul.f32 -1.442695, %v840_v43 }
 0xc51   :  { %1354 = vpow2.f32 %v1252_v46 }
 0xc54   :  { %v838_v44 = vpop.f32.mrf.mxu1 }
 0xc55   :  { %v1353_v45 = vpop.eup %1352 }
 0xc56   :  { %868 = vrot.lane.b32.xlu0 %v1353_v45, %s1376_s26 }
 0xc57   :  { %v1355_v47 = vpop.eup %1354 }
 0xc58   :  { %v844_v48 = vadd.f32 1.0, %v1355_v47  ;;  %v1307_v47 = vld [vmem:[%s1748_s2 + $0x8] sm:$0xff] }
 0xc59   :  { %1023 = vmatpush.bf16.msrb.mxu3 %v1307_v47 }
 0xc5a   :  { %1356 = vrcp.f32 %v844_v48  ;;  %v856_v55 = vand.u32 2147483648, %v844_v48  ;;  %vm850_vm9 = vweird.f32 %v844_v48  ;;  %v854_v60 = vand.u32 2147483647, %v844_v48 }
 0xc5c   :  { %v857_v57 = vor.u32 1.1754944e-38, %v856_v55  ;;  %vm855_vm11 = vcmp.eq.f32.partialorder %v854_v60, 8.507059e+37 }
 0xc60   :  { %v1357_v49 = vpop.eup %1356 }
 0xc61   :  { %v846_v51 = vmul.f32 %v1357_v49, %v844_v48  ;;  %vm851_vm8 = vweird.f32 %v1357_v49 }
 0xc62   :  { %vm852_vm10 = vmor %vm850_vm9, %vm851_vm8 }
 0xc63   :  { %v847_v52 = vsub.f32 1.0, %v846_v51 }
 0xc65   :  { %v848_v53 = vmul.f32 %v1357_v49, %v847_v52 }
 0xc67   :  { %v849_v54 = vadd.f32 %v1357_v49, %v848_v53  ;;  %v326_v53 = vadd.f32 %v1465_v16, %v1604_v26 }
 0xc69   :  { %v853_v56 = vsel %vm852_vm10, %v1357_v49, %v849_v54  ;;  %v1306_v49 = vld [vmem:[%s1748_s2] sm:$0xff] }
 0xc6a   :  { %v858_v61 = vsel %vm855_vm11, %v857_v57, %v853_v56  ;;  %1024 = vmatpush.bf16.msrb.mxu3 %v1306_v49 }
 0xc6b   :  { %v866_v0 = vmul.f32 %v864_v63, %v858_v61 }
 0xcc8   :  { %v869_v58 = vpop.permute.xlu0 %868 }
 0xcc9   :  { %v871_v62 = vmul.f32 %v869_v58, %v858_v61 }
 0xccb   :  { %873 = vrot.lane.b32.xlu2 %v871_v62, %s1376_s26 }
 0xd25   :  { %v874_v1 = vpop.permute.xlu2 %873 }
 0xd26   :  { %v876_v2 = vadd.f32 %v874_v1, %v866_v0 }
 0xd28   :  { %1358 = vtanh.f32 %v876_v2  ;;  %884 = vrot.lane.b32.xlu2 %v876_v2, %s1378_s17 }
 0xd2e   :  { %v1359_v3 = vpop.eup %1358 }
 0xd2f   :  { %879 = vrot.lane.b32.xlu0 %v1359_v3, %s1376_s26 }
 0xd82   :  { %v885_v4 = vpop.permute.xlu2 %884 }
 0xd83   :  { %887 = vst.msk [vmem:[#allocation4] sm:$0xff] %vm32_vm0, %v885_v4 }
 0xd8a   :  { %v956_v9 = vld [vmem:[#allocation4] sm:$0xff] }
 0xda1   :  { %v880_v6 = vpop.permute.xlu0 %879 }
 0xda2   :  { %v1665_v7 = vmul.f32 %v880_v6, %v858_v61 }
 0xda4   :  { %v893_v8 = vpack.c.bf16 %v1665_v7, %v1665_v7 }
 0xda6   :  { %895 = vrot.lane.b32.xlu1 %v893_v8, %s1377_s4 }
 0xdae   :  { %958 = vrot.lane.b32.xlu1 %v956_v9, %s1376_s26 }
 0xe18   :  { %v896_v11 = vpop.permute.xlu1 %895 }
 0xe19   :  { %898 = vst.msk [vmem:[#allocation5] sm:$0xf] %vm38_vm1, %v896_v11 }
 0xe1a   :  { %1253 = vst.msk [vmem:[%s1750_s6 + $0x14] sm:$0xf] %vm38_vm1, %v896_v11 }
 0xe20   :  { %v902_v12 = vld [vmem:[#allocation5] sm:$0xf]  ;;  %v959_v37 = vpop.permute.xlu1 %958 }
 0xe21   :  { %1262 = vmatmul.msk.bf16.vlgmr.msrb.gmra.mxu2 %vm32_vm0, %v902_v12 }
 0xea4   :  { %v931_v15 = vpop.f32.mrf.mxu2 }
 0xea5   :  { %v935_v18 = vadd.f32 %v931_v15, %v290_v13 }
 0xea7   :  { %1360 = vtanh.f32 %v935_v18  ;;  %v1263_v20 = vmul.f32 -1.442695, %v935_v18 }
 0xea9   :  { %1362 = vpow2.f32 %v1263_v20 }
 0xeac   :  { %v933_v14 = vpop.f32.mrf.mxu2 }
 0xead   :  { %v1361_v19 = vpop.eup %1360 }
 0xeae   :  { %963 = vrot.lane.b32.xlu0 %v1361_v19, %s1376_s26 }
 0xeaf   :  { %v1363_v21 = vpop.eup %1362 }
 0xeb0   :  { %v939_v22 = vadd.f32 1.0, %v1363_v21 }
 0xeb2   :  { %1364 = vrcp.f32 %v939_v22  ;;  %v951_v29 = vand.u32 2147483648, %v939_v22  ;;  %vm945_vm13 = vweird.f32 %v939_v22  ;;  %v949_v42 = vand.u32 2147483647, %v939_v22 }
 0xeb4   :  { %v952_v31 = vor.u32 1.1754944e-38, %v951_v29  ;;  %vm950_vm15 = vcmp.eq.f32.partialorder %v949_v42, 8.507059e+37 }
 0xeb8   :  { %v1365_v23 = vpop.eup %1364 }
 0xeb9   :  { %v941_v24 = vmul.f32 %v1365_v23, %v939_v22  ;;  %vm946_vm12 = vweird.f32 %v1365_v23 }
 0xeba   :  { %vm947_vm14 = vmor %vm945_vm13, %vm946_vm12 }
 0xebb   :  { %v942_v25 = vsub.f32 1.0, %v941_v24 }
 0xebd   :  { %v943_v27 = vmul.f32 %v1365_v23, %v942_v25 }
 0xebf   :  { %v944_v28 = vadd.f32 %v1365_v23, %v943_v27 }
 0xec1   :  { %v948_v30 = vsel %vm947_vm14, %v1365_v23, %v944_v28 }
 0xec2   :  { %v953_v35 = vsel %vm950_vm15, %v952_v31, %v948_v30 }
 0xec3   :  { %v961_v38 = vmul.f32 %v959_v37, %v953_v35 }
 0xf20   :  { %v964_v32 = vpop.permute.xlu0 %963 }
 0xf21   :  { %v966_v36 = vmul.f32 %v964_v32, %v953_v35 }
 0xf23   :  { %968 = vrot.lane.b32.xlu2 %v966_v36, %s1376_s26 }
 0xf7d   :  { %v969_v39 = vpop.permute.xlu2 %968 }
 0xf7e   :  { %v971_v40 = vadd.f32 %v969_v39, %v961_v38 }
 0xf80   :  { %1366 = vtanh.f32 %v971_v40  ;;  %979 = vrot.lane.b32.xlu2 %v971_v40, %s1378_s17 }
 0xf86   :  { %v1367_v41 = vpop.eup %1366 }
 0xf87   :  { %974 = vrot.lane.b32.xlu0 %v1367_v41, %s1376_s26 }
 0xfda   :  { %v980_v43 = vpop.permute.xlu2 %979 }
 0xfdb   :  { %982 = vst.msk [vmem:[#allocation4] sm:$0xff] %vm32_vm0, %v980_v43 }
 0xfe2   :  { %v1051_v48 = vld [vmem:[#allocation4] sm:$0xff] }
 0xff9   :  { %v975_v44 = vpop.permute.xlu0 %974 }
 0xffa   :  { %v977_v45 = vmul.f32 %v975_v44, %v953_v35 }
 0xffc   :  { %v988_v46 = vpack.c.bf16 %v977_v45, %v977_v45 }
 0xffe   :  { %990 = vrot.lane.b32.xlu1 %v988_v46, %s1377_s4 }
0x1006   :  { %1053 = vrot.lane.b32.xlu1 %v1051_v48, %s1376_s26 }
0x100e   :  { %414 = vrot.lane.b32.xlu1 %v1491_v50, %s1377_s4 }
0x1016   :  { %699 = vrot.lane.b32.xlu1 %v1615_v59, %s1377_s4 }
0x101e   :  { %984 = vrot.lane.b32.xlu1 %v977_v45, %s1377_s4 }
0x1070   :  { %v991_v51 = vpop.permute.xlu1 %990 }
0x1071   :  { %993 = vst.msk [vmem:[#allocation5] sm:$0xf] %vm38_vm1, %v991_v51 }
0x1072   :  { %1264 = vst.msk [vmem:[%s1750_s6 + $0x18] sm:$0xf] %vm38_vm1, %v991_v51 }
0x1078   :  { %v1054_v52 = vpop.permute.xlu1 %1053  ;;  %v997_v50 = vld [vmem:[#allocation5] sm:$0xf] }
0x1079   :  { %1273 = vmatmul.msk.bf16.vlgmr.msrb.gmra.mxu3 %vm32_vm0, %v997_v50 }
0x1080   :  { %v415_v59 = vpop.permute.xlu1 %414 }
0x1081   :  { %417 = vst.msk [vmem:[#allocation3] sm:$0xff] %vm32_vm0, %v415_v59 }
0x10fc   :  { %v1026_v54 = vpop.f32.mrf.mxu3 }
0x10fd   :  { %v1030_v55 = vadd.f32 %v1026_v54, %v326_v53 }
0x10ff   :  { %1368 = vtanh.f32 %v1030_v55  ;;  %v1274_v57 = vmul.f32 -1.442695, %v1030_v55 }
0x1101   :  { %1370 = vpow2.f32 %v1274_v57 }
0x1104   :  { %v1028_v60 = vpop.f32.mrf.mxu3 }
0x1105   :  { %v1369_v56 = vpop.eup %1368 }
0x1106   :  { %1058 = vrot.lane.b32.xlu0 %v1369_v56, %s1376_s26 }
0x1107   :  { %v1371_v58 = vpop.eup %1370 }
0x1108   :  { %v1034_v61 = vadd.f32 1.0, %v1371_v58 }
0x110a   :  { %1372 = vrcp.f32 %v1034_v61  ;;  %v1046_v3 = vand.u32 2147483648, %v1034_v61  ;;  %vm1040_vm3 = vweird.f32 %v1034_v61  ;;  %v1044_v16 = vand.u32 2147483647, %v1034_v61 }
0x110c   :  { %v1047_v4 = vor.u32 1.1754944e-38, %v1046_v3  ;;  %vm1045_vm5 = vcmp.eq.f32.partialorder %v1044_v16, 8.507059e+37 }
0x1110   :  { %v1373_v62 = vpop.eup %1372 }
0x1111   :  { %v1036_v63 = vmul.f32 %v1373_v62, %v1034_v61  ;;  %vm1041_vm2 = vweird.f32 %v1373_v62 }
0x1112   :  { %vm1042_vm4 = vmor %vm1040_vm3, %vm1041_vm2 }
0x1113   :  { %v1037_v0 = vsub.f32 1.0, %v1036_v63 }
0x1115   :  { %v1038_v1 = vmul.f32 %v1373_v62, %v1037_v0 }
0x1117   :  { %v1039_v2 = vadd.f32 %v1373_v62, %v1038_v1 }
0x1119   :  { %v1043_v26 = vsel %vm1042_vm4, %v1373_v62, %v1039_v2 }
0x111a   :  { %v1048_v6 = vsel %vm1045_vm5, %v1047_v4, %v1043_v26 }
0x111b   :  { %v1056_v9 = vmul.f32 %v1054_v52, %v1048_v6 }
0x1178   :  { %v1059_v5 = vpop.permute.xlu0 %1058 }
0x1179   :  { %v1061_v8 = vmul.f32 %v1059_v5, %v1048_v6 }
0x117b   :  { %1063 = vrot.lane.b32.xlu2 %v1061_v8, %s1376_s26 }
0x1183   :  { %509 = vrot.lane.b32.xlu2 %v1539_v33, %s1377_s4 }
0x118b   :  { %794 = vrot.lane.b32.xlu2 %v1640_v34, %s1377_s4 }
0x11d5   :  { %v1064_v10 = vpop.permute.xlu2 %1063 }
0x11d6   :  { %v1066_v11 = vadd.f32 %v1064_v10, %v1056_v9 }
0x11d8   :  { %1374 = vtanh.f32 %v1066_v11  ;;  %1074 = vrot.lane.b32.xlu2 %v1066_v11, %s1378_s17 }
0x11dd   :  { %v510_v12 = vpop.permute.xlu2 %509 }
0x11de   :  { %v1375_v13 = vpop.eup %1374  ;;  %512 = vst.msk [vmem:[#allocation3] sm:$0xff] %vm32_vm0, %v510_v12 }
0x11df   :  { %1069 = vrot.lane.b32.xlu0 %v1375_v13, %s1376_s26 }
0x11e5   :  { %v795_v33 = vpop.permute.xlu2 %794 }
0x11e7   :  { %604 = vrot.lane.b32.xlu0 %v1585_v17, %s1377_s4  ;;  %v700_v17 = vpop.permute.xlu1 %699 }
0x11ef   :  { %889 = vrot.lane.b32.xlu0 %v1665_v7, %s1377_s4  ;;  %v985_v21 = vpop.permute.xlu1 %984 }
0x1232   :  { %v1075_v34 = vpop.permute.xlu2 %1074 }
0x1233   :  { %1077 = vst.msk [vmem:[#allocation4] sm:$0xff] %vm32_vm0, %v1075_v34 }
0x123a   :  { %v1096_v15 = vld [vmem:[#allocation4] sm:$0xff] }
0x123b   :  { %1097 = vst.msk [vmem:[%s1751_s8] sm:$0xff] %vm32_vm0, %v1096_v15 }
0x1251   :  { %v1070_v18 = vpop.permute.xlu0 %1069 }
0x1252   :  { %v1072_v14 = vmul.f32 %v1070_v18, %v1048_v6 }
0x1254   :  { %v1083_v19 = vpack.c.bf16 %v1072_v14, %v1072_v14  ;;  %1079 = vrot.lane.b32.xlu0 %v1072_v14, %s1377_s4 }
0x1256   :  { %1085 = vrot.lane.b32.xlu1 %v1083_v19, %s1377_s4 }
0x1259   :  { %v605_v20 = vpop.permute.xlu0 %604 }
0x125a   :  { %607 = vst.msk [vmem:[#allocation3] sm:$0xff] %vm32_vm0, %v605_v20 }
0x125b   :  { %702 = vst.msk [vmem:[#allocation3] sm:$0xff] %vm32_vm0, %v700_v17 }
0x125c   :  { %797 = vst.msk [vmem:[#allocation3] sm:$0xff] %vm32_vm0, %v795_v33 }
0x1261   :  { %v890_v7 = vpop.permute.xlu0 %889 }
0x1262   :  { %892 = vst.msk [vmem:[#allocation3] sm:$0xff] %vm32_vm0, %v890_v7 }
0x1263   :  { %987 = vst.msk [vmem:[#allocation3] sm:$0xff] %vm32_vm0, %v985_v21 }
0x12c6   :  { %v1080_v22 = vpop.permute.xlu0 %1079 }
0x12c7   :  { %1082 = vst.msk [vmem:[#allocation3] sm:$0xff] %vm32_vm0, %v1080_v22 }
0x12c8   :  { %v1086_v23 = vpop.permute.xlu1 %1085 }
0x12c9   :  { %1088 = vst.msk [vmem:[#allocation5] sm:$0xf] %vm38_vm1, %v1086_v23 }
0x12ca   :  { %1275 = vst.msk [vmem:[%s1750_s6 + $0x1c] sm:$0xf] %vm38_vm1, %v1086_v23 }
0x12ce   :  { %v1094_v24 = vld [vmem:[#allocation3] sm:$0xff] }
0x12cf   :  { %1095 = vst.msk [vmem:[%s1752_s7] sm:$0xff] %vm32_vm0, %v1094_v24 }

</bundles_post_ra>
